<compile_context>
chip_gen: v6e
topology: v6e:2x2x1
jax: 0.10.0
libtpu: 0.0.40
codegen_flags: <defaults>
</compile_context>

<pallas_src>
import jax
import jax.numpy as jnp
import numpy as np
from jax import lax
from jax.experimental import pallas as pl
from jax.experimental.pallas import tpu as pltpu


def generator2_kernel(gx0_ref,     # (T, B, 3H) hoisted layer-0 x-proj (+ fused biases)
                      w0fb_ref,    # (OD, B, 3H) layer-0 feedback rows, pre-broadcast over B
                      w0h_ref,     # (H, 3H)    layer-0 recurrent weights (gates fused r|z|n)
                      b0hn_ref,    # (B, H)     layer-0 b_hn (lives inside r*(.))
                      w1x_ref,     # (H, 3H)    layer-1 input (h0) weights (gates fused)
                      b1x_ref,     # (B, 3H)    layer-1 x-side biases (r/z: bih+bhh, n: bih)
                      w1h_ref,     # (H, 3H)    layer-1 recurrent (h1) weights (gates fused)
                      b1hn_ref,    # (B, H)     layer-1 b_hn
                      wfc_ref,     # (H, OD)
                      bfc_ref,     # (B, OD)
                      out_ref):    # (B, T*OD)
    T = gx0_ref.shape[0]
    B, H = b0hn_ref.shape
    OD = wfc_ref.shape[1]
    H2 = 2 * H
    f32 = jnp.float32

    def dot(a, b):
        return jnp.dot(a, b, preferred_element_type=f32)

    # Time-invariant operands -> vregs once.  Fused weights are ~10 vregs total,
    # so pinning them no longer risks spills the way 36 per-gate vregs did.
    w0fb = [w0fb_ref[d] for d in range(OD)]    # OD x (B, 3H)
    w0h = w0h_ref[...]
    b0hn = b0hn_ref[...]
    w1x = w1x_ref[...]
    b1x = b1x_ref[...]
    w1h = w1h_ref[...]
    b1hn = b1hn_ref[...]
    wfc = wfc_ref[...]
    bfc = bfc_ref[...]

    def gru_cell(xg, h, wh, bhn):
        # xg: (B, 3H) x-side pre-activation with b_ih (and b_hr/b_hz) already added.
        gh = dot(h, wh)                                        # one fused-gate matmul
        rz = jax.nn.sigmoid(xg[:, :H2] + gh[:, :H2])           # r|z in one EUP pass
        n = jnp.tanh(xg[:, H2:] + rz[:, :H] * (gh[:, H2:] + bhn))
        z = rz[:, H:]
        return (1.0 - z) * n + z * h

    # Recurrent state + fc feedback live in vregs (loop carries); no VMEM round-trips.
    h0 = jnp.zeros((B, H), f32)
    h1 = jnp.zeros((B, H), f32)
    fc = jnp.ones((B, OD), f32)   # the "ones" feedback columns of the t=0 input

    # TODO(synk): nn.GRU inter-layer dropout (p=0.5) is train-mode only; this kernel
    # implements eval-mode semantics (no dropout).
    # Static unroll: T is small & static, so every slice/store index is a
    # compile-time constant and the scheduler can overlap adjacent steps.
    for i in range(T):
        # ---- layer 0: feedback projection as VPU broadcast-MACs (K=OD=2) ----
        fb = fc[:, 0:1] * w0fb[0]
        for d in range(1, OD):
            fb = fb + fc[:, d:d + 1] * w0fb[d]
        h0 = gru_cell(gx0_ref[i] + fb, h0, w0h, b0hn)

        # ---- layer 1 ----
        h1 = gru_cell(dot(h0, w1x) + b1x, h1, w1h, b1hn)

        # ---- fc + tanh; store this step's output; feed back for step i+1 ----
        fc = jnp.tanh(dot(h1, wfc) + bfc)
        out_ref[:, i * OD:(i + 1) * OD] = fc


def _fuse_x_bias(bih, bhh, H):
    # r|z gates take bih+bhh on the x-side; n takes bih only (bhh_n stays inside r*(.)).
    return bih + jnp.concatenate([bhh[:2 * H], jnp.zeros((H,), bhh.dtype)])


def init_params(key, input_channels, hidden_size, output_dim):
    """Deterministic PyTorch-like init (uniform +-1/sqrt(H)), weights pre-transposed."""
    H = hidden_size
    input_size = input_channels + output_dim
    bound = 1.0 / np.sqrt(H)
    keys = jax.random.split(key, 10)

    def u(kk, shape):
        return jax.random.uniform(kk, shape, jnp.float32, -bound, bound)

    return dict(
        wih0=u(keys[0], (input_size, 3 * H)),
        whh0=u(keys[1], (H, 3 * H)),
        bih0=u(keys[2], (1, 3 * H)),
        bhh0=u(keys[3], (1, 3 * H)),
        wih1=u(keys[4], (H, 3 * H)),
        whh1=u(keys[5], (H, 3 * H)),
        bih1=u(keys[6], (1, 3 * H)),
        bhh1=u(keys[7], (1, 3 * H)),
        wfc=u(keys[8], (H, output_dim)),
        bfc=u(keys[9], (1, output_dim)),
    )


def generator2_forward(x, params, noise_key, *, output_dim=2, hidden_size=32):
    B, T, C = x.shape
    OD, H = output_dim, hidden_size
    f32 = jnp.float32

    # initial_noise_and_emotion = randn(B, C); [..., -4:] = x[:, 0, -4:]
    noise = jax.random.normal(noise_key, (B, C), dtype=f32)
    noise = noise.at[:, -4:].set(x[:, 0, -4:])

    # x-part of the GRU input at step t: noise at t=0, x[:, t-1, :] for t>=1
    # (step t's input is cat(fc_{t-1}, x[:, t-1, :]); cat(ones, noise) at t=0).
    x_tm = jnp.transpose(x, (1, 0, 2)).astype(f32)                 # (T, B, C)
    x_feed = jnp.concatenate([noise[None], x_tm[:T - 1]], axis=0)  # (T, B, C)

    # ---- weight prep (gates stay fused along the 3H axis) ----
    wih0_fb = params["wih0"][:OD]                  # (OD, 3H) fc-feedback rows
    wih0_x = params["wih0"][OD:]                   # (C, 3H)  x rows
    bih0, bhh0 = params["bih0"][0], params["bhh0"][0]
    bih1, bhh1 = params["bih1"][0], params["bhh1"][0]

    # Hoisted layer-0 x-projection: ONE (T*B, C) x (C, 3H) matmul for the whole
    # rollout, biases folded in (default precision -- it does not sit on the
    # in-kernel critical path and matches the reference's precision regime).
    gx0 = (jnp.dot(x_feed.reshape(T * B, C), wih0_x)
           + _fuse_x_bias(bih0, bhh0, H)).reshape(T, B, 3 * H)

    # Feedback rows pre-broadcast over B: the kernel only lane-broadcasts fc.
    w0fb = jnp.broadcast_to(wih0_fb[:, None, :], (OD, B, 3 * H))

    b0hn = jnp.broadcast_to(bhh0[2 * H:], (B, H))
    b1x = jnp.broadcast_to(_fuse_x_bias(bih1, bhh1, H), (B, 3 * H))
    b1hn = jnp.broadcast_to(bhh1[2 * H:], (B, H))
    bfc = jnp.broadcast_to(params["bfc"][0], (B, OD))

    vmem = pl.BlockSpec(memory_space=pltpu.MemorySpace.VMEM)
    out_flat = pl.pallas_call(
        generator2_kernel,
        out_shape=jax.ShapeDtypeStruct((B, T * OD), f32),
        in_specs=[vmem] * 10,
        out_specs=vmem,
    )(gx0, w0fb, params["whh0"], b0hn,
      params["wih1"], b1x, params["whh1"], b1hn,
      params["wfc"], bfc)

    # (B, T*OD) -> (B, T, OD) is a row-major-compatible reshape (no data movement).
    return out_flat.reshape(B, T, OD)


def generator2_reference(x, params, noise_key, *, output_dim=2, hidden_size=32):
    """Pure-JAX reference of the same forward (correctness oracle)."""
    B, T, C = x.shape
    OD, H = output_dim, hidden_size

    def gru_cell(xin, h, wih, whh, bih, bhh):
        gx = xin @ wih + bih
        gh = h @ whh + bhh
        r = jax.nn.sigmoid(gx[:, :H] + gh[:, :H])
        z = jax.nn.sigmoid(gx[:, H:2 * H] + gh[:, H:2 * H])
        n = jnp.tanh(gx[:, 2 * H:] + r * gh[:, 2 * H:])
        return (1.0 - z) * n + z * h

    noise = jax.random.normal(noise_key, (B, C), dtype=jnp.float32)
    noise = noise.at[:, -4:].set(x[:, 0, -4:])
    inp0 = jnp.concatenate([jnp.ones((B, OD), jnp.float32), noise], axis=1)

    def step(carry, x_i):
        h0, h1, inp = carry
        h0 = gru_cell(inp, h0, params["wih0"], params["whh0"],
                      params["bih0"], params["bhh0"])
        h1 = gru_cell(h0, h1, params["wih1"], params["whh1"],
                      params["bih1"], params["bhh1"])
        fc = jnp.tanh(h1 @ params["wfc"] + params["bfc"])
        nxt = jnp.concatenate([fc, x_i], axis=1)
        return (h0, h1, nxt), fc

    x_tm = jnp.transpose(x, (1, 0, 2))
    init = (jnp.zeros((B, H), jnp.float32), jnp.zeros((B, H), jnp.float32), inp0)
    _, outs = lax.scan(step, init, x_tm)
    return jnp.transpose(outs, (1, 0, 2))


if __name__ == "__main__":
    key = jax.random.PRNGKey(0)
    pkey, xkey, nkey = jax.random.split(key, 3)

    # Small shapes consistent with the module: input_channels=8 (noise ch 0:4,
    # emotion ch 4:8 == last 4), batch=4, seq=8, hidden=32, output_dim=2.
    B, T, C = 4, 8, 8
    H, OD = 32, 2

    params = init_params(pkey, C, H, OD)
    x = jax.random.normal(xkey, (B, T, C), dtype=jnp.float32)

    fwd = jax.jit(lambda xx, pp, kk: generator2_forward(
        xx, pp, kk, output_dim=OD, hidden_size=H))
    out = jax.block_until_ready(fwd(x, params, nkey))
    assert out.shape == (B, T, OD)

    ref = generator2_reference(x, params, nkey, output_dim=OD, hidden_size=H)
    # Tolerance accommodates TPU default-matmul-precision (bf16-pass) differences
    # between the XLA reference and the kernel's differently-grouped f32 matmuls;
    # real semantic bugs produce O(0.1+) errors at these magnitudes.
    np.testing.assert_allclose(np.asarray(out), np.asarray(ref),
                               atol=2e-3, rtol=2e-3)
    print("KERNEL_OK")
</pallas_src>

<mosaic_0001>
module attributes {stable_mosaic.version = 11 : i64} {
  func.func @generator2_kernel(%arg0: memref<8x4x96xf32, #tpu.memory_space<vmem>>, %arg1: memref<2x4x96xf32, #tpu.memory_space<vmem>>, %arg2: memref<32x96xf32, #tpu.memory_space<vmem>>, %arg3: memref<4x32xf32, #tpu.memory_space<vmem>>, %arg4: memref<32x96xf32, #tpu.memory_space<vmem>>, %arg5: memref<4x96xf32, #tpu.memory_space<vmem>>, %arg6: memref<32x96xf32, #tpu.memory_space<vmem>>, %arg7: memref<4x32xf32, #tpu.memory_space<vmem>>, %arg8: memref<32x2xf32, #tpu.memory_space<vmem>>, %arg9: memref<4x2xf32, #tpu.memory_space<vmem>>, %arg10: memref<4x16xf32, #tpu.memory_space<vmem>>) attributes {dimension_semantics = [], scalar_prefetch = 0 : i64, scratch_operands = 0 : i64, tpu.core_type = #tpu.core_type<tc>} {
    %c0 = arith.constant 0 : index
    %c0_0 = arith.constant 0 : index
    %c0_1 = arith.constant 0 : index
    %0 = vector.load %arg1[%c0, %c0_0, %c0_1] : memref<2x4x96xf32, #tpu.memory_space<vmem>>, vector<1x4x96xf32>
    %1 = vector.shape_cast %0 : vector<1x4x96xf32> to vector<4x96xf32>
    %c1 = arith.constant 1 : index
    %c0_2 = arith.constant 0 : index
    %c0_3 = arith.constant 0 : index
    %2 = vector.load %arg1[%c1, %c0_2, %c0_3] : memref<2x4x96xf32, #tpu.memory_space<vmem>>, vector<1x4x96xf32>
    %3 = vector.shape_cast %2 : vector<1x4x96xf32> to vector<4x96xf32>
    %c0_4 = arith.constant 0 : index
    %c0_5 = arith.constant 0 : index
    %4 = vector.load %arg2[%c0_4, %c0_5] : memref<32x96xf32, #tpu.memory_space<vmem>>, vector<32x96xf32>
    %c0_6 = arith.constant 0 : index
    %c0_7 = arith.constant 0 : index
    %5 = vector.load %arg3[%c0_6, %c0_7] : memref<4x32xf32, #tpu.memory_space<vmem>>, vector<4x32xf32>
    %c0_8 = arith.constant 0 : index
    %c0_9 = arith.constant 0 : index
    %6 = vector.load %arg4[%c0_8, %c0_9] : memref<32x96xf32, #tpu.memory_space<vmem>>, vector<32x96xf32>
    %c0_10 = arith.constant 0 : index
    %c0_11 = arith.constant 0 : index
    %7 = vector.load %arg5[%c0_10, %c0_11] : memref<4x96xf32, #tpu.memory_space<vmem>>, vector<4x96xf32>
    %c0_12 = arith.constant 0 : index
    %c0_13 = arith.constant 0 : index
    %8 = vector.load %arg6[%c0_12, %c0_13] : memref<32x96xf32, #tpu.memory_space<vmem>>, vector<32x96xf32>
    %c0_14 = arith.constant 0 : index
    %c0_15 = arith.constant 0 : index
    %9 = vector.load %arg7[%c0_14, %c0_15] : memref<4x32xf32, #tpu.memory_space<vmem>>, vector<4x32xf32>
    %c0_16 = arith.constant 0 : index
    %c0_17 = arith.constant 0 : index
    %10 = vector.load %arg8[%c0_16, %c0_17] : memref<32x2xf32, #tpu.memory_space<vmem>>, vector<32x2xf32>
    %c0_18 = arith.constant 0 : index
    %c0_19 = arith.constant 0 : index
    %11 = vector.load %arg9[%c0_18, %c0_19] : memref<4x2xf32, #tpu.memory_space<vmem>>, vector<4x2xf32>
    %cst = arith.constant 0.000000e+00 : f32
    %12 = vector.broadcast %cst : f32 to vector<4x32xf32>
    %cst_20 = arith.constant 0.000000e+00 : f32
    %13 = vector.broadcast %cst_20 : f32 to vector<4x32xf32>
    %cst_21 = arith.constant 1.000000e+00 : f32
    %14 = vector.broadcast %cst_21 : f32 to vector<4x2xf32>
    %15 = vector.extract_strided_slice %14 {offsets = [0, 0], sizes = [4, 1], strides = [1, 1]} : vector<4x2xf32> to vector<4x1xf32>
    %16 = vector.broadcast %15 : vector<4x1xf32> to vector<4x96xf32>
    %17 = arith.mulf %16, %1 : vector<4x96xf32>
    %18 = vector.extract_strided_slice %14 {offsets = [0, 1], sizes = [4, 1], strides = [1, 1]} : vector<4x2xf32> to vector<4x1xf32>
    %19 = vector.broadcast %18 : vector<4x1xf32> to vector<4x96xf32>
    %20 = arith.mulf %19, %3 : vector<4x96xf32>
    %21 = arith.addf %17, %20 : vector<4x96xf32>
    %c0_22 = arith.constant 0 : index
    %c0_23 = arith.constant 0 : index
    %c0_24 = arith.constant 0 : index
    %22 = vector.load %arg0[%c0_22, %c0_23, %c0_24] : memref<8x4x96xf32, #tpu.memory_space<vmem>>, vector<1x4x96xf32>
    %23 = vector.shape_cast %22 : vector<1x4x96xf32> to vector<4x96xf32>
    %24 = arith.addf %23, %21 : vector<4x96xf32>
    %cst_25 = arith.constant dense<0.000000e+00> : vector<4x96xf32>
    %25 = tpu.matmul %12, %4, %cst_25 {dimension_numbers = #tpu.dot_dimension_numbers<[1], [0], [0], [1], [0, 0, 1, 1], [], []>} : vector<4x32xf32>, vector<32x96xf32>, vector<4x96xf32> -> vector<4x96xf32>
    %26 = vector.extract_strided_slice %24 {offsets = [0, 0], sizes = [4, 64], strides = [1, 1]} : vector<4x96xf32> to vector<4x64xf32>
    %27 = vector.extract_strided_slice %25 {offsets = [0, 0], sizes = [4, 64], strides = [1, 1]} : vector<4x96xf32> to vector<4x64xf32>
    %28 = arith.addf %26, %27 : vector<4x64xf32>
    %29 = arith.negf %28 : vector<4x64xf32>
    %30 = math.exp %29 : vector<4x64xf32>
    %cst_26 = arith.constant 1.000000e+00 : f32
    %31 = vector.broadcast %cst_26 : f32 to vector<4x64xf32>
    %32 = arith.addf %31, %30 : vector<4x64xf32>
    %33 = arith.divf %31, %32 : vector<4x64xf32>
    %34 = vector.extract_strided_slice %24 {offsets = [0, 64], sizes = [4, 32], strides = [1, 1]} : vector<4x96xf32> to vector<4x32xf32>
    %35 = vector.extract_strided_slice %33 {offsets = [0, 0], sizes = [4, 32], strides = [1, 1]} : vector<4x64xf32> to vector<4x32xf32>
    %36 = vector.extract_strided_slice %25 {offsets = [0, 64], sizes = [4, 32], strides = [1, 1]} : vector<4x96xf32> to vector<4x32xf32>
    %37 = arith.addf %36, %5 : vector<4x32xf32>
    %38 = arith.mulf %35, %37 : vector<4x32xf32>
    %39 = arith.addf %34, %38 : vector<4x32xf32>
    %40 = math.tanh %39 : vector<4x32xf32>
    %41 = vector.extract_strided_slice %33 {offsets = [0, 32], sizes = [4, 32], strides = [1, 1]} : vector<4x64xf32> to vector<4x32xf32>
    %cst_27 = arith.constant 1.000000e+00 : f32
    %42 = vector.broadcast %cst_27 : f32 to vector<4x32xf32>
    %43 = arith.subf %42, %41 : vector<4x32xf32>
    %44 = arith.mulf %43, %40 : vector<4x32xf32>
    %45 = arith.mulf %41, %12 : vector<4x32xf32>
    %46 = arith.addf %44, %45 : vector<4x32xf32>
    %cst_28 = arith.constant dense<0.000000e+00> : vector<4x96xf32>
    %47 = tpu.matmul %46, %6, %cst_28 {dimension_numbers = #tpu.dot_dimension_numbers<[1], [0], [0], [1], [0, 0, 1, 1], [], []>} : vector<4x32xf32>, vector<32x96xf32>, vector<4x96xf32> -> vector<4x96xf32>
    %48 = arith.addf %47, %7 : vector<4x96xf32>
    %cst_29 = arith.constant dense<0.000000e+00> : vector<4x96xf32>
    %49 = tpu.matmul %13, %8, %cst_29 {dimension_numbers = #tpu.dot_dimension_numbers<[1], [0], [0], [1], [0, 0, 1, 1], [], []>} : vector<4x32xf32>, vector<32x96xf32>, vector<4x96xf32> -> vector<4x96xf32>
    %50 = vector.extract_strided_slice %48 {offsets = [0, 0], sizes = [4, 64], strides = [1, 1]} : vector<4x96xf32> to vector<4x64xf32>
    %51 = vector.extract_strided_slice %49 {offsets = [0, 0], sizes = [4, 64], strides = [1, 1]} : vector<4x96xf32> to vector<4x64xf32>
    %52 = arith.addf %50, %51 : vector<4x64xf32>
    %53 = arith.negf %52 : vector<4x64xf32>
    %54 = math.exp %53 : vector<4x64xf32>
    %cst_30 = arith.constant 1.000000e+00 : f32
    %55 = vector.broadcast %cst_30 : f32 to vector<4x64xf32>
    %56 = arith.addf %55, %54 : vector<4x64xf32>
    %57 = arith.divf %55, %56 : vector<4x64xf32>
    %58 = vector.extract_strided_slice %48 {offsets = [0, 64], sizes = [4, 32], strides = [1, 1]} : vector<4x96xf32> to vector<4x32xf32>
    %59 = vector.extract_strided_slice %57 {offsets = [0, 0], sizes = [4, 32], strides = [1, 1]} : vector<4x64xf32> to vector<4x32xf32>
    %60 = vector.extract_strided_slice %49 {offsets = [0, 64], sizes = [4, 32], strides = [1, 1]} : vector<4x96xf32> to vector<4x32xf32>
    %61 = arith.addf %60, %9 : vector<4x32xf32>
    %62 = arith.mulf %59, %61 : vector<4x32xf32>
    %63 = arith.addf %58, %62 : vector<4x32xf32>
    %64 = math.tanh %63 : vector<4x32xf32>
    %65 = vector.extract_strided_slice %57 {offsets = [0, 32], sizes = [4, 32], strides = [1, 1]} : vector<4x64xf32> to vector<4x32xf32>
    %cst_31 = arith.constant 1.000000e+00 : f32
    %66 = vector.broadcast %cst_31 : f32 to vector<4x32xf32>
    %67 = arith.subf %66, %65 : vector<4x32xf32>
    %68 = arith.mulf %67, %64 : vector<4x32xf32>
    %69 = arith.mulf %65, %13 : vector<4x32xf32>
    %70 = arith.addf %68, %69 : vector<4x32xf32>
    %cst_32 = arith.constant dense<0.000000e+00> : vector<4x2xf32>
    %71 = tpu.matmul %70, %10, %cst_32 {dimension_numbers = #tpu.dot_dimension_numbers<[1], [0], [0], [1], [0, 0, 1, 1], [], []>} : vector<4x32xf32>, vector<32x2xf32>, vector<4x2xf32> -> vector<4x2xf32>
    %72 = arith.addf %71, %11 : vector<4x2xf32>
    %73 = math.tanh %72 : vector<4x2xf32>
    %c0_33 = arith.constant 0 : index
    %c0_34 = arith.constant 0 : index
    %74 = vector.load %arg10[%c0_33, %c0_34] : memref<4x16xf32, #tpu.memory_space<vmem>>, vector<4x2xf32>
    tpu.vector_store %arg10[%c0_33, %c0_34], %73 {strides = array<i32>} : memref<4x16xf32, #tpu.memory_space<vmem>>, vector<4x2xf32>,
    %75 = vector.extract_strided_slice %73 {offsets = [0, 0], sizes = [4, 1], strides = [1, 1]} : vector<4x2xf32> to vector<4x1xf32>
    %76 = vector.broadcast %75 : vector<4x1xf32> to vector<4x96xf32>
    %77 = arith.mulf %76, %1 : vector<4x96xf32>
    %78 = vector.extract_strided_slice %73 {offsets = [0, 1], sizes = [4, 1], strides = [1, 1]} : vector<4x2xf32> to vector<4x1xf32>
    %79 = vector.broadcast %78 : vector<4x1xf32> to vector<4x96xf32>
    %80 = arith.mulf %79, %3 : vector<4x96xf32>
    %81 = arith.addf %77, %80 : vector<4x96xf32>
    %c1_35 = arith.constant 1 : index
    %c0_36 = arith.constant 0 : index
    %c0_37 = arith.constant 0 : index
    %82 = vector.load %arg0[%c1_35, %c0_36, %c0_37] : memref<8x4x96xf32, #tpu.memory_space<vmem>>, vector<1x4x96xf32>
    %83 = vector.shape_cast %82 : vector<1x4x96xf32> to vector<4x96xf32>
    %84 = arith.addf %83, %81 : vector<4x96xf32>
    %cst_38 = arith.constant dense<0.000000e+00> : vector<4x96xf32>
    %85 = tpu.matmul %46, %4, %cst_38 {dimension_numbers = #tpu.dot_dimension_numbers<[1], [0], [0], [1], [0, 0, 1, 1], [], []>} : vector<4x32xf32>, vector<32x96xf32>, vector<4x96xf32> -> vector<4x96xf32>
    %86 = vector.extract_strided_slice %84 {offsets = [0, 0], sizes = [4, 64], strides = [1, 1]} : vector<4x96xf32> to vector<4x64xf32>
    %87 = vector.extract_strided_slice %85 {offsets = [0, 0], sizes = [4, 64], strides = [1, 1]} : vector<4x96xf32> to vector<4x64xf32>
    %88 = arith.addf %86, %87 : vector<4x64xf32>
    %89 = arith.negf %88 : vector<4x64xf32>
    %90 = math.exp %89 : vector<4x64xf32>
    %cst_39 = arith.constant 1.000000e+00 : f32
    %91 = vector.broadcast %cst_39 : f32 to vector<4x64xf32>
    %92 = arith.addf %91, %90 : vector<4x64xf32>
    %93 = arith.divf %91, %92 : vector<4x64xf32>
    %94 = vector.extract_strided_slice %84 {offsets = [0, 64], sizes = [4, 32], strides = [1, 1]} : vector<4x96xf32> to vector<4x32xf32>
    %95 = vector.extract_strided_slice %93 {offsets = [0, 0], sizes = [4, 32], strides = [1, 1]} : vector<4x64xf32> to vector<4x32xf32>
    %96 = vector.extract_strided_slice %85 {offsets = [0, 64], sizes = [4, 32], strides = [1, 1]} : vector<4x96xf32> to vector<4x32xf32>
    %97 = arith.addf %96, %5 : vector<4x32xf32>
    %98 = arith.mulf %95, %97 : vector<4x32xf32>
    %99 = arith.addf %94, %98 : vector<4x32xf32>
    %100 = math.tanh %99 : vector<4x32xf32>
    %101 = vector.extract_strided_slice %93 {offsets = [0, 32], sizes = [4, 32], strides = [1, 1]} : vector<4x64xf32> to vector<4x32xf32>
    %cst_40 = arith.constant 1.000000e+00 : f32
    %102 = vector.broadcast %cst_40 : f32 to vector<4x32xf32>
    %103 = arith.subf %102, %101 : vector<4x32xf32>
    %104 = arith.mulf %103, %100 : vector<4x32xf32>
    %105 = arith.mulf %101, %46 : vector<4x32xf32>
    %106 = arith.addf %104, %105 : vector<4x32xf32>
    %cst_41 = arith.constant dense<0.000000e+00> : vector<4x96xf32>
    %107 = tpu.matmul %106, %6, %cst_41 {dimension_numbers = #tpu.dot_dimension_numbers<[1], [0], [0], [1], [0, 0, 1, 1], [], []>} : vector<4x32xf32>, vector<32x96xf32>, vector<4x96xf32> -> vector<4x96xf32>
    %108 = arith.addf %107, %7 : vector<4x96xf32>
    %cst_42 = arith.constant dense<0.000000e+00> : vector<4x96xf32>
    %109 = tpu.matmul %70, %8, %cst_42 {dimension_numbers = #tpu.dot_dimension_numbers<[1], [0], [0], [1], [0, 0, 1, 1], [], []>} : vector<4x32xf32>, vector<32x96xf32>, vector<4x96xf32> -> vector<4x96xf32>
    %110 = vector.extract_strided_slice %108 {offsets = [0, 0], sizes = [4, 64], strides = [1, 1]} : vector<4x96xf32> to vector<4x64xf32>
    %111 = vector.extract_strided_slice %109 {offsets = [0, 0], sizes = [4, 64], strides = [1, 1]} : vector<4x96xf32> to vector<4x64xf32>
    %112 = arith.addf %110, %111 : vector<4x64xf32>
    %113 = arith.negf %112 : vector<4x64xf32>
    %114 = math.exp %113 : vector<4x64xf32>
    %cst_43 = arith.constant 1.000000e+00 : f32
    %115 = vector.broadcast %cst_43 : f32 to vector<4x64xf32>
    %116 = arith.addf %115, %114 : vector<4x64xf32>
    %117 = arith.divf %115, %116 : vector<4x64xf32>
    %118 = vector.extract_strided_slice %108 {offsets = [0, 64], sizes = [4, 32], strides = [1, 1]} : vector<4x96xf32> to vector<4x32xf32>
    %119 = vector.extract_strided_slice %117 {offsets = [0, 0], sizes = [4, 32], strides = [1, 1]} : vector<4x64xf32> to vector<4x32xf32>
    %120 = vector.extract_strided_slice %109 {offsets = [0, 64], sizes = [4, 32], strides = [1, 1]} : vector<4x96xf32> to vector<4x32xf32>
    %121 = arith.addf %120, %9 : vector<4x32xf32>
    %122 = arith.mulf %119, %121 : vector<4x32xf32>
    %123 = arith.addf %118, %122 : vector<4x32xf32>
    %124 = math.tanh %123 : vector<4x32xf32>
    %125 = vector.extract_strided_slice %117 {offsets = [0, 32], sizes = [4, 32], strides = [1, 1]} : vector<4x64xf32> to vector<4x32xf32>
    %cst_44 = arith.constant 1.000000e+00 : f32
    %126 = vector.broadcast %cst_44 : f32 to vector<4x32xf32>
    %127 = arith.subf %126, %125 : vector<4x32xf32>
    %128 = arith.mulf %127, %124 : vector<4x32xf32>
    %129 = arith.mulf %125, %70 : vector<4x32xf32>
    %130 = arith.addf %128, %129 : vector<4x32xf32>
    %cst_45 = arith.constant dense<0.000000e+00> : vector<4x2xf32>
    %131 = tpu.matmul %130, %10, %cst_45 {dimension_numbers = #tpu.dot_dimension_numbers<[1], [0], [0], [1], [0, 0, 1, 1], [], []>} : vector<4x32xf32>, vector<32x2xf32>, vector<4x2xf32> -> vector<4x2xf32>
    %132 = arith.addf %131, %11 : vector<4x2xf32>
    %133 = math.tanh %132 : vector<4x2xf32>
    %c0_46 = arith.constant 0 : index
    %c2 = arith.constant 2 : index
    %134 = vector.load %arg10[%c0_46, %c2] : memref<4x16xf32, #tpu.memory_space<vmem>>, vector<4x2xf32>
    tpu.vector_store %arg10[%c0_46, %c2], %133 {strides = array<i32>} : memref<4x16xf32, #tpu.memory_space<vmem>>, vector<4x2xf32>,
    %135 = vector.extract_strided_slice %133 {offsets = [0, 0], sizes = [4, 1], strides = [1, 1]} : vector<4x2xf32> to vector<4x1xf32>
    %136 = vector.broadcast %135 : vector<4x1xf32> to vector<4x96xf32>
    %137 = arith.mulf %136, %1 : vector<4x96xf32>
    %138 = vector.extract_strided_slice %133 {offsets = [0, 1], sizes = [4, 1], strides = [1, 1]} : vector<4x2xf32> to vector<4x1xf32>
    %139 = vector.broadcast %138 : vector<4x1xf32> to vector<4x96xf32>
    %140 = arith.mulf %139, %3 : vector<4x96xf32>
    %141 = arith.addf %137, %140 : vector<4x96xf32>
    %c2_47 = arith.constant 2 : index
    %c0_48 = arith.constant 0 : index
    %c0_49 = arith.constant 0 : index
    %142 = vector.load %arg0[%c2_47, %c0_48, %c0_49] : memref<8x4x96xf32, #tpu.memory_space<vmem>>, vector<1x4x96xf32>
    %143 = vector.shape_cast %142 : vector<1x4x96xf32> to vector<4x96xf32>
    %144 = arith.addf %143, %141 : vector<4x96xf32>
    %cst_50 = arith.constant dense<0.000000e+00> : vector<4x96xf32>
    %145 = tpu.matmul %106, %4, %cst_50 {dimension_numbers = #tpu.dot_dimension_numbers<[1], [0], [0], [1], [0, 0, 1, 1], [], []>} : vector<4x32xf32>, vector<32x96xf32>, vector<4x96xf32> -> vector<4x96xf32>
    %146 = vector.extract_strided_slice %144 {offsets = [0, 0], sizes = [4, 64], strides = [1, 1]} : vector<4x96xf32> to vector<4x64xf32>
    %147 = vector.extract_strided_slice %145 {offsets = [0, 0], sizes = [4, 64], strides = [1, 1]} : vector<4x96xf32> to vector<4x64xf32>
    %148 = arith.addf %146, %147 : vector<4x64xf32>
    %149 = arith.negf %148 : vector<4x64xf32>
    %150 = math.exp %149 : vector<4x64xf32>
    %cst_51 = arith.constant 1.000000e+00 : f32
    %151 = vector.broadcast %cst_51 : f32 to vector<4x64xf32>
    %152 = arith.addf %151, %150 : vector<4x64xf32>
    %153 = arith.divf %151, %152 : vector<4x64xf32>
    %154 = vector.extract_strided_slice %144 {offsets = [0, 64], sizes = [4, 32], strides = [1, 1]} : vector<4x96xf32> to vector<4x32xf32>
    %155 = vector.extract_strided_slice %153 {offsets = [0, 0], sizes = [4, 32], strides = [1, 1]} : vector<4x64xf32> to vector<4x32xf32>
    %156 = vector.extract_strided_slice %145 {offsets = [0, 64], sizes = [4, 32], strides = [1, 1]} : vector<4x96xf32> to vector<4x32xf32>
    %157 = arith.addf %156, %5 : vector<4x32xf32>
    %158 = arith.mulf %155, %157 : vector<4x32xf32>
    %159 = arith.addf %154, %158 : vector<4x32xf32>
    %160 = math.tanh %159 : vector<4x32xf32>
    %161 = vector.extract_strided_slice %153 {offsets = [0, 32], sizes = [4, 32], strides = [1, 1]} : vector<4x64xf32> to vector<4x32xf32>
    %cst_52 = arith.constant 1.000000e+00 : f32
    %162 = vector.broadcast %cst_52 : f32 to vector<4x32xf32>
    %163 = arith.subf %162, %161 : vector<4x32xf32>
    %164 = arith.mulf %163, %160 : vector<4x32xf32>
    %165 = arith.mulf %161, %106 : vector<4x32xf32>
    %166 = arith.addf %164, %165 : vector<4x32xf32>
    %cst_53 = arith.constant dense<0.000000e+00> : vector<4x96xf32>
    %167 = tpu.matmul %166, %6, %cst_53 {dimension_numbers = #tpu.dot_dimension_numbers<[1], [0], [0], [1], [0, 0, 1, 1], [], []>} : vector<4x32xf32>, vector<32x96xf32>, vector<4x96xf32> -> vector<4x96xf32>
    %168 = arith.addf %167, %7 : vector<4x96xf32>
    %cst_54 = arith.constant dense<0.000000e+00> : vector<4x96xf32>
    %169 = tpu.matmul %130, %8, %cst_54 {dimension_numbers = #tpu.dot_dimension_numbers<[1], [0], [0], [1], [0, 0, 1, 1], [], []>} : vector<4x32xf32>, vector<32x96xf32>, vector<4x96xf32> -> vector<4x96xf32>
    %170 = vector.extract_strided_slice %168 {offsets = [0, 0], sizes = [4, 64], strides = [1, 1]} : vector<4x96xf32> to vector<4x64xf32>
    %171 = vector.extract_strided_slice %169 {offsets = [0, 0], sizes = [4, 64], strides = [1, 1]} : vector<4x96xf32> to vector<4x64xf32>
    %172 = arith.addf %170, %171 : vector<4x64xf32>
    %173 = arith.negf %172 : vector<4x64xf32>
    %174 = math.exp %173 : vector<4x64xf32>
    %cst_55 = arith.constant 1.000000e+00 : f32
    %175 = vector.broadcast %cst_55 : f32 to vector<4x64xf32>
    %176 = arith.addf %175, %174 : vector<4x64xf32>
    %177 = arith.divf %175, %176 : vector<4x64xf32>
    %178 = vector.extract_strided_slice %168 {offsets = [0, 64], sizes = [4, 32], strides = [1, 1]} : vector<4x96xf32> to vector<4x32xf32>
    %179 = vector.extract_strided_slice %177 {offsets = [0, 0], sizes = [4, 32], strides = [1, 1]} : vector<4x64xf32> to vector<4x32xf32>
    %180 = vector.extract_strided_slice %169 {offsets = [0, 64], sizes = [4, 32], strides = [1, 1]} : vector<4x96xf32> to vector<4x32xf32>
    %181 = arith.addf %180, %9 : vector<4x32xf32>
    %182 = arith.mulf %179, %181 : vector<4x32xf32>
    %183 = arith.addf %178, %182 : vector<4x32xf32>
    %184 = math.tanh %183 : vector<4x32xf32>
    %185 = vector.extract_strided_slice %177 {offsets = [0, 32], sizes = [4, 32], strides = [1, 1]} : vector<4x64xf32> to vector<4x32xf32>
    %cst_56 = arith.constant 1.000000e+00 : f32
    %186 = vector.broadcast %cst_56 : f32 to vector<4x32xf32>
    %187 = arith.subf %186, %185 : vector<4x32xf32>
    %188 = arith.mulf %187, %184 : vector<4x32xf32>
    %189 = arith.mulf %185, %130 : vector<4x32xf32>
    %190 = arith.addf %188, %189 : vector<4x32xf32>
    %cst_57 = arith.constant dense<0.000000e+00> : vector<4x2xf32>
    %191 = tpu.matmul %190, %10, %cst_57 {dimension_numbers = #tpu.dot_dimension_numbers<[1], [0], [0], [1], [0, 0, 1, 1], [], []>} : vector<4x32xf32>, vector<32x2xf32>, vector<4x2xf32> -> vector<4x2xf32>
    %192 = arith.addf %191, %11 : vector<4x2xf32>
    %193 = math.tanh %192 : vector<4x2xf32>
    %c0_58 = arith.constant 0 : index
    %c4 = arith.constant 4 : index
    %194 = vector.load %arg10[%c0_58, %c4] : memref<4x16xf32, #tpu.memory_space<vmem>>, vector<4x2xf32>
    tpu.vector_store %arg10[%c0_58, %c4], %193 {strides = array<i32>} : memref<4x16xf32, #tpu.memory_space<vmem>>, vector<4x2xf32>,
    %195 = vector.extract_strided_slice %193 {offsets = [0, 0], sizes = [4, 1], strides = [1, 1]} : vector<4x2xf32> to vector<4x1xf32>
    %196 = vector.broadcast %195 : vector<4x1xf32> to vector<4x96xf32>
    %197 = arith.mulf %196, %1 : vector<4x96xf32>
    %198 = vector.extract_strided_slice %193 {offsets = [0, 1], sizes = [4, 1], strides = [1, 1]} : vector<4x2xf32> to vector<4x1xf32>
    %199 = vector.broadcast %198 : vector<4x1xf32> to vector<4x96xf32>
    %200 = arith.mulf %199, %3 : vector<4x96xf32>
    %201 = arith.addf %197, %200 : vector<4x96xf32>
    %c3 = arith.constant 3 : index
    %c0_59 = arith.constant 0 : index
    %c0_60 = arith.constant 0 : index
    %202 = vector.load %arg0[%c3, %c0_59, %c0_60] : memref<8x4x96xf32, #tpu.memory_space<vmem>>, vector<1x4x96xf32>
    %203 = vector.shape_cast %202 : vector<1x4x96xf32> to vector<4x96xf32>
    %204 = arith.addf %203, %201 : vector<4x96xf32>
    %cst_61 = arith.constant dense<0.000000e+00> : vector<4x96xf32>
    %205 = tpu.matmul %166, %4, %cst_61 {dimension_numbers = #tpu.dot_dimension_numbers<[1], [0], [0], [1], [0, 0, 1, 1], [], []>} : vector<4x32xf32>, vector<32x96xf32>, vector<4x96xf32> -> vector<4x96xf32>
    %206 = vector.extract_strided_slice %204 {offsets = [0, 0], sizes = [4, 64], strides = [1, 1]} : vector<4x96xf32> to vector<4x64xf32>
    %207 = vector.extract_strided_slice %205 {offsets = [0, 0], sizes = [4, 64], strides = [1, 1]} : vector<4x96xf32> to vector<4x64xf32>
    %208 = arith.addf %206, %207 : vector<4x64xf32>
    %209 = arith.negf %208 : vector<4x64xf32>
    %210 = math.exp %209 : vector<4x64xf32>
    %cst_62 = arith.constant 1.000000e+00 : f32
    %211 = vector.broadcast %cst_62 : f32 to vector<4x64xf32>
    %212 = arith.addf %211, %210 : vector<4x64xf32>
    %213 = arith.divf %211, %212 : vector<4x64xf32>
    %214 = vector.extract_strided_slice %204 {offsets = [0, 64], sizes = [4, 32], strides = [1, 1]} : vector<4x96xf32> to vector<4x32xf32>
    %215 = vector.extract_strided_slice %213 {offsets = [0, 0], sizes = [4, 32], strides = [1, 1]} : vector<4x64xf32> to vector<4x32xf32>
    %216 = vector.extract_strided_slice %205 {offsets = [0, 64], sizes = [4, 32], strides = [1, 1]} : vector<4x96xf32> to vector<4x32xf32>
    %217 = arith.addf %216, %5 : vector<4x32xf32>
    %218 = arith.mulf %215, %217 : vector<4x32xf32>
    %219 = arith.addf %214, %218 : vector<4x32xf32>
    %220 = math.tanh %219 : vector<4x32xf32>
    %221 = vector.extract_strided_slice %213 {offsets = [0, 32], sizes = [4, 32], strides = [1, 1]} : vector<4x64xf32> to vector<4x32xf32>
    %cst_63 = arith.constant 1.000000e+00 : f32
    %222 = vector.broadcast %cst_63 : f32 to vector<4x32xf32>
    %223 = arith.subf %222, %221 : vector<4x32xf32>
    %224 = arith.mulf %223, %220 : vector<4x32xf32>
    %225 = arith.mulf %221, %166 : vector<4x32xf32>
    %226 = arith.addf %224, %225 : vector<4x32xf32>
    %cst_64 = arith.constant dense<0.000000e+00> : vector<4x96xf32>
    %227 = tpu.matmul %226, %6, %cst_64 {dimension_numbers = #tpu.dot_dimension_numbers<[1], [0], [0], [1], [0, 0, 1, 1], [], []>} : vector<4x32xf32>, vector<32x96xf32>, vector<4x96xf32> -> vector<4x96xf32>
    %228 = arith.addf %227, %7 : vector<4x96xf32>
    %cst_65 = arith.constant dense<0.000000e+00> : vector<4x96xf32>
    %229 = tpu.matmul %190, %8, %cst_65 {dimension_numbers = #tpu.dot_dimension_numbers<[1], [0], [0], [1], [0, 0, 1, 1], [], []>} : vector<4x32xf32>, vector<32x96xf32>, vector<4x96xf32> -> vector<4x96xf32>
    %230 = vector.extract_strided_slice %228 {offsets = [0, 0], sizes = [4, 64], strides = [1, 1]} : vector<4x96xf32> to vector<4x64xf32>
    %231 = vector.extract_strided_slice %229 {offsets = [0, 0], sizes = [4, 64], strides = [1, 1]} : vector<4x96xf32> to vector<4x64xf32>
    %232 = arith.addf %230, %231 : vector<4x64xf32>
    %233 = arith.negf %232 : vector<4x64xf32>
    %234 = math.exp %233 : vector<4x64xf32>
    %cst_66 = arith.constant 1.000000e+00 : f32
    %235 = vector.broadcast %cst_66 : f32 to vector<4x64xf32>
    %236 = arith.addf %235, %234 : vector<4x64xf32>
    %237 = arith.divf %235, %236 : vector<4x64xf32>
    %238 = vector.extract_strided_slice %228 {offsets = [0, 64], sizes = [4, 32], strides = [1, 1]} : vector<4x96xf32> to vector<4x32xf32>
    %239 = vector.extract_strided_slice %237 {offsets = [0, 0], sizes = [4, 32], strides = [1, 1]} : vector<4x64xf32> to vector<4x32xf32>
    %240 = vector.extract_strided_slice %229 {offsets = [0, 64], sizes = [4, 32], strides = [1, 1]} : vector<4x96xf32> to vector<4x32xf32>
    %241 = arith.addf %240, %9 : vector<4x32xf32>
    %242 = arith.mulf %239, %241 : vector<4x32xf32>
    %243 = arith.addf %238, %242 : vector<4x32xf32>
    %244 = math.tanh %243 : vector<4x32xf32>
    %245 = vector.extract_strided_slice %237 {offsets = [0, 32], sizes = [4, 32], strides = [1, 1]} : vector<4x64xf32> to vector<4x32xf32>
    %cst_67 = arith.constant 1.000000e+00 : f32
    %246 = vector.broadcast %cst_67 : f32 to vector<4x32xf32>
    %247 = arith.subf %246, %245 : vector<4x32xf32>
    %248 = arith.mulf %247, %244 : vector<4x32xf32>
    %249 = arith.mulf %245, %190 : vector<4x32xf32>
    %250 = arith.addf %248, %249 : vector<4x32xf32>
    %cst_68 = arith.constant dense<0.000000e+00> : vector<4x2xf32>
    %251 = tpu.matmul %250, %10, %cst_68 {dimension_numbers = #tpu.dot_dimension_numbers<[1], [0], [0], [1], [0, 0, 1, 1], [], []>} : vector<4x32xf32>, vector<32x2xf32>, vector<4x2xf32> -> vector<4x2xf32>
    %252 = arith.addf %251, %11 : vector<4x2xf32>
    %253 = math.tanh %252 : vector<4x2xf32>
    %c0_69 = arith.constant 0 : index
    %c6 = arith.constant 6 : index
    %254 = vector.load %arg10[%c0_69, %c6] : memref<4x16xf32, #tpu.memory_space<vmem>>, vector<4x2xf32>
    tpu.vector_store %arg10[%c0_69, %c6], %253 {strides = array<i32>} : memref<4x16xf32, #tpu.memory_space<vmem>>, vector<4x2xf32>,
    %255 = vector.extract_strided_slice %253 {offsets = [0, 0], sizes = [4, 1], strides = [1, 1]} : vector<4x2xf32> to vector<4x1xf32>
    %256 = vector.broadcast %255 : vector<4x1xf32> to vector<4x96xf32>
    %257 = arith.mulf %256, %1 : vector<4x96xf32>
    %258 = vector.extract_strided_slice %253 {offsets = [0, 1], sizes = [4, 1], strides = [1, 1]} : vector<4x2xf32> to vector<4x1xf32>
    %259 = vector.broadcast %258 : vector<4x1xf32> to vector<4x96xf32>
    %260 = arith.mulf %259, %3 : vector<4x96xf32>
    %261 = arith.addf %257, %260 : vector<4x96xf32>
    %c4_70 = arith.constant 4 : index
    %c0_71 = arith.constant 0 : index
    %c0_72 = arith.constant 0 : index
    %262 = vector.load %arg0[%c4_70, %c0_71, %c0_72] : memref<8x4x96xf32, #tpu.memory_space<vmem>>, vector<1x4x96xf32>
    %263 = vector.shape_cast %262 : vector<1x4x96xf32> to vector<4x96xf32>
    %264 = arith.addf %263, %261 : vector<4x96xf32>
    %cst_73 = arith.constant dense<0.000000e+00> : vector<4x96xf32>
    %265 = tpu.matmul %226, %4, %cst_73 {dimension_numbers = #tpu.dot_dimension_numbers<[1], [0], [0], [1], [0, 0, 1, 1], [], []>} : vector<4x32xf32>, vector<32x96xf32>, vector<4x96xf32> -> vector<4x96xf32>
    %266 = vector.extract_strided_slice %264 {offsets = [0, 0], sizes = [4, 64], strides = [1, 1]} : vector<4x96xf32> to vector<4x64xf32>
    %267 = vector.extract_strided_slice %265 {offsets = [0, 0], sizes = [4, 64], strides = [1, 1]} : vector<4x96xf32> to vector<4x64xf32>
    %268 = arith.addf %266, %267 : vector<4x64xf32>
    %269 = arith.negf %268 : vector<4x64xf32>
    %270 = math.exp %269 : vector<4x64xf32>
    %cst_74 = arith.constant 1.000000e+00 : f32
    %271 = vector.broadcast %cst_74 : f32 to vector<4x64xf32>
    %272 = arith.addf %271, %270 : vector<4x64xf32>
    %273 = arith.divf %271, %272 : vector<4x64xf32>
    %274 = vector.extract_strided_slice %264 {offsets = [0, 64], sizes = [4, 32], strides = [1, 1]} : vector<4x96xf32> to vector<4x32xf32>
    %275 = vector.extract_strided_slice %273 {offsets = [0, 0], sizes = [4, 32], strides = [1, 1]} : vector<4x64xf32> to vector<4x32xf32>
    %276 = vector.extract_strided_slice %265 {offsets = [0, 64], sizes = [4, 32], strides = [1, 1]} : vector<4x96xf32> to vector<4x32xf32>
    %277 = arith.addf %276, %5 : vector<4x32xf32>
    %278 = arith.mulf %275, %277 : vector<4x32xf32>
    %279 = arith.addf %274, %278 : vector<4x32xf32>
    %280 = math.tanh %279 : vector<4x32xf32>
    %281 = vector.extract_strided_slice %273 {offsets = [0, 32], sizes = [4, 32], strides = [1, 1]} : vector<4x64xf32> to vector<4x32xf32>
    %cst_75 = arith.constant 1.000000e+00 : f32
    %282 = vector.broadcast %cst_75 : f32 to vector<4x32xf32>
    %283 = arith.subf %282, %281 : vector<4x32xf32>
    %284 = arith.mulf %283, %280 : vector<4x32xf32>
    %285 = arith.mulf %281, %226 : vector<4x32xf32>
    %286 = arith.addf %284, %285 : vector<4x32xf32>
    %cst_76 = arith.constant dense<0.000000e+00> : vector<4x96xf32>
    %287 = tpu.matmul %286, %6, %cst_76 {dimension_numbers = #tpu.dot_dimension_numbers<[1], [0], [0], [1], [0, 0, 1, 1], [], []>} : vector<4x32xf32>, vector<32x96xf32>, vector<4x96xf32> -> vector<4x96xf32>
    %288 = arith.addf %287, %7 : vector<4x96xf32>
    %cst_77 = arith.constant dense<0.000000e+00> : vector<4x96xf32>
    %289 = tpu.matmul %250, %8, %cst_77 {dimension_numbers = #tpu.dot_dimension_numbers<[1], [0], [0], [1], [0, 0, 1, 1], [], []>} : vector<4x32xf32>, vector<32x96xf32>, vector<4x96xf32> -> vector<4x96xf32>
    %290 = vector.extract_strided_slice %288 {offsets = [0, 0], sizes = [4, 64], strides = [1, 1]} : vector<4x96xf32> to vector<4x64xf32>
    %291 = vector.extract_strided_slice %289 {offsets = [0, 0], sizes = [4, 64], strides = [1, 1]} : vector<4x96xf32> to vector<4x64xf32>
    %292 = arith.addf %290, %291 : vector<4x64xf32>
    %293 = arith.negf %292 : vector<4x64xf32>
    %294 = math.exp %293 : vector<4x64xf32>
    %cst_78 = arith.constant 1.000000e+00 : f32
    %295 = vector.broadcast %cst_78 : f32 to vector<4x64xf32>
    %296 = arith.addf %295, %294 : vector<4x64xf32>
    %297 = arith.divf %295, %296 : vector<4x64xf32>
    %298 = vector.extract_strided_slice %288 {offsets = [0, 64], sizes = [4, 32], strides = [1, 1]} : vector<4x96xf32> to vector<4x32xf32>
    %299 = vector.extract_strided_slice %297 {offsets = [0, 0], sizes = [4, 32], strides = [1, 1]} : vector<4x64xf32> to vector<4x32xf32>
    %300 = vector.extract_strided_slice %289 {offsets = [0, 64], sizes = [4, 32], strides = [1, 1]} : vector<4x96xf32> to vector<4x32xf32>
    %301 = arith.addf %300, %9 : vector<4x32xf32>
    %302 = arith.mulf %299, %301 : vector<4x32xf32>
    %303 = arith.addf %298, %302 : vector<4x32xf32>
    %304 = math.tanh %303 : vector<4x32xf32>
    %305 = vector.extract_strided_slice %297 {offsets = [0, 32], sizes = [4, 32], strides = [1, 1]} : vector<4x64xf32> to vector<4x32xf32>
    %cst_79 = arith.constant 1.000000e+00 : f32
    %306 = vector.broadcast %cst_79 : f32 to vector<4x32xf32>
    %307 = arith.subf %306, %305 : vector<4x32xf32>
    %308 = arith.mulf %307, %304 : vector<4x32xf32>
    %309 = arith.mulf %305, %250 : vector<4x32xf32>
    %310 = arith.addf %308, %309 : vector<4x32xf32>
    %cst_80 = arith.constant dense<0.000000e+00> : vector<4x2xf32>
    %311 = tpu.matmul %310, %10, %cst_80 {dimension_numbers = #tpu.dot_dimension_numbers<[1], [0], [0], [1], [0, 0, 1, 1], [], []>} : vector<4x32xf32>, vector<32x2xf32>, vector<4x2xf32> -> vector<4x2xf32>
    %312 = arith.addf %311, %11 : vector<4x2xf32>
    %313 = math.tanh %312 : vector<4x2xf32>
    %c0_81 = arith.constant 0 : index
    %c8 = arith.constant 8 : index
    %314 = vector.load %arg10[%c0_81, %c8] : memref<4x16xf32, #tpu.memory_space<vmem>>, vector<4x2xf32>
    tpu.vector_store %arg10[%c0_81, %c8], %313 {strides = array<i32>} : memref<4x16xf32, #tpu.memory_space<vmem>>, vector<4x2xf32>,
    %315 = vector.extract_strided_slice %313 {offsets = [0, 0], sizes = [4, 1], strides = [1, 1]} : vector<4x2xf32> to vector<4x1xf32>
    %316 = vector.broadcast %315 : vector<4x1xf32> to vector<4x96xf32>
    %317 = arith.mulf %316, %1 : vector<4x96xf32>
    %318 = vector.extract_strided_slice %313 {offsets = [0, 1], sizes = [4, 1], strides = [1, 1]} : vector<4x2xf32> to vector<4x1xf32>
    %319 = vector.broadcast %318 : vector<4x1xf32> to vector<4x96xf32>
    %320 = arith.mulf %319, %3 : vector<4x96xf32>
    %321 = arith.addf %317, %320 : vector<4x96xf32>
    %c5 = arith.constant 5 : index
    %c0_82 = arith.constant 0 : index
    %c0_83 = arith.constant 0 : index
    %322 = vector.load %arg0[%c5, %c0_82, %c0_83] : memref<8x4x96xf32, #tpu.memory_space<vmem>>, vector<1x4x96xf32>
    %323 = vector.shape_cast %322 : vector<1x4x96xf32> to vector<4x96xf32>
    %324 = arith.addf %323, %321 : vector<4x96xf32>
    %cst_84 = arith.constant dense<0.000000e+00> : vector<4x96xf32>
    %325 = tpu.matmul %286, %4, %cst_84 {dimension_numbers = #tpu.dot_dimension_numbers<[1], [0], [0], [1], [0, 0, 1, 1], [], []>} : vector<4x32xf32>, vector<32x96xf32>, vector<4x96xf32> -> vector<4x96xf32>
    %326 = vector.extract_strided_slice %324 {offsets = [0, 0], sizes = [4, 64], strides = [1, 1]} : vector<4x96xf32> to vector<4x64xf32>
    %327 = vector.extract_strided_slice %325 {offsets = [0, 0], sizes = [4, 64], strides = [1, 1]} : vector<4x96xf32> to vector<4x64xf32>
    %328 = arith.addf %326, %327 : vector<4x64xf32>
    %329 = arith.negf %328 : vector<4x64xf32>
    %330 = math.exp %329 : vector<4x64xf32>
    %cst_85 = arith.constant 1.000000e+00 : f32
    %331 = vector.broadcast %cst_85 : f32 to vector<4x64xf32>
    %332 = arith.addf %331, %330 : vector<4x64xf32>
    %333 = arith.divf %331, %332 : vector<4x64xf32>
    %334 = vector.extract_strided_slice %324 {offsets = [0, 64], sizes = [4, 32], strides = [1, 1]} : vector<4x96xf32> to vector<4x32xf32>
    %335 = vector.extract_strided_slice %333 {offsets = [0, 0], sizes = [4, 32], strides = [1, 1]} : vector<4x64xf32> to vector<4x32xf32>
    %336 = vector.extract_strided_slice %325 {offsets = [0, 64], sizes = [4, 32], strides = [1, 1]} : vector<4x96xf32> to vector<4x32xf32>
    %337 = arith.addf %336, %5 : vector<4x32xf32>
    %338 = arith.mulf %335, %337 : vector<4x32xf32>
    %339 = arith.addf %334, %338 : vector<4x32xf32>
    %340 = math.tanh %339 : vector<4x32xf32>
    %341 = vector.extract_strided_slice %333 {offsets = [0, 32], sizes = [4, 32], strides = [1, 1]} : vector<4x64xf32> to vector<4x32xf32>
    %cst_86 = arith.constant 1.000000e+00 : f32
    %342 = vector.broadcast %cst_86 : f32 to vector<4x32xf32>
    %343 = arith.subf %342, %341 : vector<4x32xf32>
    %344 = arith.mulf %343, %340 : vector<4x32xf32>
    %345 = arith.mulf %341, %286 : vector<4x32xf32>
    %346 = arith.addf %344, %345 : vector<4x32xf32>
    %cst_87 = arith.constant dense<0.000000e+00> : vector<4x96xf32>
    %347 = tpu.matmul %346, %6, %cst_87 {dimension_numbers = #tpu.dot_dimension_numbers<[1], [0], [0], [1], [0, 0, 1, 1], [], []>} : vector<4x32xf32>, vector<32x96xf32>, vector<4x96xf32> -> vector<4x96xf32>
    %348 = arith.addf %347, %7 : vector<4x96xf32>
    %cst_88 = arith.constant dense<0.000000e+00> : vector<4x96xf32>
    %349 = tpu.matmul %310, %8, %cst_88 {dimension_numbers = #tpu.dot_dimension_numbers<[1], [0], [0], [1], [0, 0, 1, 1], [], []>} : vector<4x32xf32>, vector<32x96xf32>, vector<4x96xf32> -> vector<4x96xf32>
    %350 = vector.extract_strided_slice %348 {offsets = [0, 0], sizes = [4, 64], strides = [1, 1]} : vector<4x96xf32> to vector<4x64xf32>
    %351 = vector.extract_strided_slice %349 {offsets = [0, 0], sizes = [4, 64], strides = [1, 1]} : vector<4x96xf32> to vector<4x64xf32>
    %352 = arith.addf %350, %351 : vector<4x64xf32>
    %353 = arith.negf %352 : vector<4x64xf32>
    %354 = math.exp %353 : vector<4x64xf32>
    %cst_89 = arith.constant 1.000000e+00 : f32
    %355 = vector.broadcast %cst_89 : f32 to vector<4x64xf32>
    %356 = arith.addf %355, %354 : vector<4x64xf32>
    %357 = arith.divf %355, %356 : vector<4x64xf32>
    %358 = vector.extract_strided_slice %348 {offsets = [0, 64], sizes = [4, 32], strides = [1, 1]} : vector<4x96xf32> to vector<4x32xf32>
    %359 = vector.extract_strided_slice %357 {offsets = [0, 0], sizes = [4, 32], strides = [1, 1]} : vector<4x64xf32> to vector<4x32xf32>
    %360 = vector.extract_strided_slice %349 {offsets = [0, 64], sizes = [4, 32], strides = [1, 1]} : vector<4x96xf32> to vector<4x32xf32>
    %361 = arith.addf %360, %9 : vector<4x32xf32>
    %362 = arith.mulf %359, %361 : vector<4x32xf32>
    %363 = arith.addf %358, %362 : vector<4x32xf32>
    %364 = math.tanh %363 : vector<4x32xf32>
    %365 = vector.extract_strided_slice %357 {offsets = [0, 32], sizes = [4, 32], strides = [1, 1]} : vector<4x64xf32> to vector<4x32xf32>
    %cst_90 = arith.constant 1.000000e+00 : f32
    %366 = vector.broadcast %cst_90 : f32 to vector<4x32xf32>
    %367 = arith.subf %366, %365 : vector<4x32xf32>
    %368 = arith.mulf %367, %364 : vector<4x32xf32>
    %369 = arith.mulf %365, %310 : vector<4x32xf32>
    %370 = arith.addf %368, %369 : vector<4x32xf32>
    %cst_91 = arith.constant dense<0.000000e+00> : vector<4x2xf32>
    %371 = tpu.matmul %370, %10, %cst_91 {dimension_numbers = #tpu.dot_dimension_numbers<[1], [0], [0], [1], [0, 0, 1, 1], [], []>} : vector<4x32xf32>, vector<32x2xf32>, vector<4x2xf32> -> vector<4x2xf32>
    %372 = arith.addf %371, %11 : vector<4x2xf32>
    %373 = math.tanh %372 : vector<4x2xf32>
    %c0_92 = arith.constant 0 : index
    %c10 = arith.constant 10 : index
    %374 = vector.load %arg10[%c0_92, %c10] : memref<4x16xf32, #tpu.memory_space<vmem>>, vector<4x2xf32>
    tpu.vector_store %arg10[%c0_92, %c10], %373 {strides = array<i32>} : memref<4x16xf32, #tpu.memory_space<vmem>>, vector<4x2xf32>,
    %375 = vector.extract_strided_slice %373 {offsets = [0, 0], sizes = [4, 1], strides = [1, 1]} : vector<4x2xf32> to vector<4x1xf32>
    %376 = vector.broadcast %375 : vector<4x1xf32> to vector<4x96xf32>
    %377 = arith.mulf %376, %1 : vector<4x96xf32>
    %378 = vector.extract_strided_slice %373 {offsets = [0, 1], sizes = [4, 1], strides = [1, 1]} : vector<4x2xf32> to vector<4x1xf32>
    %379 = vector.broadcast %378 : vector<4x1xf32> to vector<4x96xf32>
    %380 = arith.mulf %379, %3 : vector<4x96xf32>
    %381 = arith.addf %377, %380 : vector<4x96xf32>
    %c6_93 = arith.constant 6 : index
    %c0_94 = arith.constant 0 : index
    %c0_95 = arith.constant 0 : index
    %382 = vector.load %arg0[%c6_93, %c0_94, %c0_95] : memref<8x4x96xf32, #tpu.memory_space<vmem>>, vector<1x4x96xf32>
    %383 = vector.shape_cast %382 : vector<1x4x96xf32> to vector<4x96xf32>
    %384 = arith.addf %383, %381 : vector<4x96xf32>
    %cst_96 = arith.constant dense<0.000000e+00> : vector<4x96xf32>
    %385 = tpu.matmul %346, %4, %cst_96 {dimension_numbers = #tpu.dot_dimension_numbers<[1], [0], [0], [1], [0, 0, 1, 1], [], []>} : vector<4x32xf32>, vector<32x96xf32>, vector<4x96xf32> -> vector<4x96xf32>
    %386 = vector.extract_strided_slice %384 {offsets = [0, 0], sizes = [4, 64], strides = [1, 1]} : vector<4x96xf32> to vector<4x64xf32>
    %387 = vector.extract_strided_slice %385 {offsets = [0, 0], sizes = [4, 64], strides = [1, 1]} : vector<4x96xf32> to vector<4x64xf32>
    %388 = arith.addf %386, %387 : vector<4x64xf32>
    %389 = arith.negf %388 : vector<4x64xf32>
    %390 = math.exp %389 : vector<4x64xf32>
    %cst_97 = arith.constant 1.000000e+00 : f32
    %391 = vector.broadcast %cst_97 : f32 to vector<4x64xf32>
    %392 = arith.addf %391, %390 : vector<4x64xf32>
    %393 = arith.divf %391, %392 : vector<4x64xf32>
    %394 = vector.extract_strided_slice %384 {offsets = [0, 64], sizes = [4, 32], strides = [1, 1]} : vector<4x96xf32> to vector<4x32xf32>
    %395 = vector.extract_strided_slice %393 {offsets = [0, 0], sizes = [4, 32], strides = [1, 1]} : vector<4x64xf32> to vector<4x32xf32>
    %396 = vector.extract_strided_slice %385 {offsets = [0, 64], sizes = [4, 32], strides = [1, 1]} : vector<4x96xf32> to vector<4x32xf32>
    %397 = arith.addf %396, %5 : vector<4x32xf32>
    %398 = arith.mulf %395, %397 : vector<4x32xf32>
    %399 = arith.addf %394, %398 : vector<4x32xf32>
    %400 = math.tanh %399 : vector<4x32xf32>
    %401 = vector.extract_strided_slice %393 {offsets = [0, 32], sizes = [4, 32], strides = [1, 1]} : vector<4x64xf32> to vector<4x32xf32>
    %cst_98 = arith.constant 1.000000e+00 : f32
    %402 = vector.broadcast %cst_98 : f32 to vector<4x32xf32>
    %403 = arith.subf %402, %401 : vector<4x32xf32>
    %404 = arith.mulf %403, %400 : vector<4x32xf32>
    %405 = arith.mulf %401, %346 : vector<4x32xf32>
    %406 = arith.addf %404, %405 : vector<4x32xf32>
    %cst_99 = arith.constant dense<0.000000e+00> : vector<4x96xf32>
    %407 = tpu.matmul %406, %6, %cst_99 {dimension_numbers = #tpu.dot_dimension_numbers<[1], [0], [0], [1], [0, 0, 1, 1], [], []>} : vector<4x32xf32>, vector<32x96xf32>, vector<4x96xf32> -> vector<4x96xf32>
    %408 = arith.addf %407, %7 : vector<4x96xf32>
    %cst_100 = arith.constant dense<0.000000e+00> : vector<4x96xf32>
    %409 = tpu.matmul %370, %8, %cst_100 {dimension_numbers = #tpu.dot_dimension_numbers<[1], [0], [0], [1], [0, 0, 1, 1], [], []>} : vector<4x32xf32>, vector<32x96xf32>, vector<4x96xf32> -> vector<4x96xf32>
    %410 = vector.extract_strided_slice %408 {offsets = [0, 0], sizes = [4, 64], strides = [1, 1]} : vector<4x96xf32> to vector<4x64xf32>
    %411 = vector.extract_strided_slice %409 {offsets = [0, 0], sizes = [4, 64], strides = [1, 1]} : vector<4x96xf32> to vector<4x64xf32>
    %412 = arith.addf %410, %411 : vector<4x64xf32>
    %413 = arith.negf %412 : vector<4x64xf32>
    %414 = math.exp %413 : vector<4x64xf32>
    %cst_101 = arith.constant 1.000000e+00 : f32
    %415 = vector.broadcast %cst_101 : f32 to vector<4x64xf32>
    %416 = arith.addf %415, %414 : vector<4x64xf32>
    %417 = arith.divf %415, %416 : vector<4x64xf32>
    %418 = vector.extract_strided_slice %408 {offsets = [0, 64], sizes = [4, 32], strides = [1, 1]} : vector<4x96xf32> to vector<4x32xf32>
    %419 = vector.extract_strided_slice %417 {offsets = [0, 0], sizes = [4, 32], strides = [1, 1]} : vector<4x64xf32> to vector<4x32xf32>
    %420 = vector.extract_strided_slice %409 {offsets = [0, 64], sizes = [4, 32], strides = [1, 1]} : vector<4x96xf32> to vector<4x32xf32>
    %421 = arith.addf %420, %9 : vector<4x32xf32>
    %422 = arith.mulf %419, %421 : vector<4x32xf32>
    %423 = arith.addf %418, %422 : vector<4x32xf32>
    %424 = math.tanh %423 : vector<4x32xf32>
    %425 = vector.extract_strided_slice %417 {offsets = [0, 32], sizes = [4, 32], strides = [1, 1]} : vector<4x64xf32> to vector<4x32xf32>
    %cst_102 = arith.constant 1.000000e+00 : f32
    %426 = vector.broadcast %cst_102 : f32 to vector<4x32xf32>
    %427 = arith.subf %426, %425 : vector<4x32xf32>
    %428 = arith.mulf %427, %424 : vector<4x32xf32>
    %429 = arith.mulf %425, %370 : vector<4x32xf32>
    %430 = arith.addf %428, %429 : vector<4x32xf32>
    %cst_103 = arith.constant dense<0.000000e+00> : vector<4x2xf32>
    %431 = tpu.matmul %430, %10, %cst_103 {dimension_numbers = #tpu.dot_dimension_numbers<[1], [0], [0], [1], [0, 0, 1, 1], [], []>} : vector<4x32xf32>, vector<32x2xf32>, vector<4x2xf32> -> vector<4x2xf32>
    %432 = arith.addf %431, %11 : vector<4x2xf32>
    %433 = math.tanh %432 : vector<4x2xf32>
    %c0_104 = arith.constant 0 : index
    %c12 = arith.constant 12 : index
    %434 = vector.load %arg10[%c0_104, %c12] : memref<4x16xf32, #tpu.memory_space<vmem>>, vector<4x2xf32>
    tpu.vector_store %arg10[%c0_104, %c12], %433 {strides = array<i32>} : memref<4x16xf32, #tpu.memory_space<vmem>>, vector<4x2xf32>,
    %435 = vector.extract_strided_slice %433 {offsets = [0, 0], sizes = [4, 1], strides = [1, 1]} : vector<4x2xf32> to vector<4x1xf32>
    %436 = vector.broadcast %435 : vector<4x1xf32> to vector<4x96xf32>
    %437 = arith.mulf %436, %1 : vector<4x96xf32>
    %438 = vector.extract_strided_slice %433 {offsets = [0, 1], sizes = [4, 1], strides = [1, 1]} : vector<4x2xf32> to vector<4x1xf32>
    %439 = vector.broadcast %438 : vector<4x1xf32> to vector<4x96xf32>
    %440 = arith.mulf %439, %3 : vector<4x96xf32>
    %441 = arith.addf %437, %440 : vector<4x96xf32>
    %c7 = arith.constant 7 : index
    %c0_105 = arith.constant 0 : index
    %c0_106 = arith.constant 0 : index
    %442 = vector.load %arg0[%c7, %c0_105, %c0_106] : memref<8x4x96xf32, #tpu.memory_space<vmem>>, vector<1x4x96xf32>
    %443 = vector.shape_cast %442 : vector<1x4x96xf32> to vector<4x96xf32>
    %444 = arith.addf %443, %441 : vector<4x96xf32>
    %cst_107 = arith.constant dense<0.000000e+00> : vector<4x96xf32>
    %445 = tpu.matmul %406, %4, %cst_107 {dimension_numbers = #tpu.dot_dimension_numbers<[1], [0], [0], [1], [0, 0, 1, 1], [], []>} : vector<4x32xf32>, vector<32x96xf32>, vector<4x96xf32> -> vector<4x96xf32>
    %446 = vector.extract_strided_slice %444 {offsets = [0, 0], sizes = [4, 64], strides = [1, 1]} : vector<4x96xf32> to vector<4x64xf32>
    %447 = vector.extract_strided_slice %445 {offsets = [0, 0], sizes = [4, 64], strides = [1, 1]} : vector<4x96xf32> to vector<4x64xf32>
    %448 = arith.addf %446, %447 : vector<4x64xf32>
    %449 = arith.negf %448 : vector<4x64xf32>
    %450 = math.exp %449 : vector<4x64xf32>
    %cst_108 = arith.constant 1.000000e+00 : f32
    %451 = vector.broadcast %cst_108 : f32 to vector<4x64xf32>
    %452 = arith.addf %451, %450 : vector<4x64xf32>
    %453 = arith.divf %451, %452 : vector<4x64xf32>
    %454 = vector.extract_strided_slice %444 {offsets = [0, 64], sizes = [4, 32], strides = [1, 1]} : vector<4x96xf32> to vector<4x32xf32>
    %455 = vector.extract_strided_slice %453 {offsets = [0, 0], sizes = [4, 32], strides = [1, 1]} : vector<4x64xf32> to vector<4x32xf32>
    %456 = vector.extract_strided_slice %445 {offsets = [0, 64], sizes = [4, 32], strides = [1, 1]} : vector<4x96xf32> to vector<4x32xf32>
    %457 = arith.addf %456, %5 : vector<4x32xf32>
    %458 = arith.mulf %455, %457 : vector<4x32xf32>
    %459 = arith.addf %454, %458 : vector<4x32xf32>
    %460 = math.tanh %459 : vector<4x32xf32>
    %461 = vector.extract_strided_slice %453 {offsets = [0, 32], sizes = [4, 32], strides = [1, 1]} : vector<4x64xf32> to vector<4x32xf32>
    %cst_109 = arith.constant 1.000000e+00 : f32
    %462 = vector.broadcast %cst_109 : f32 to vector<4x32xf32>
    %463 = arith.subf %462, %461 : vector<4x32xf32>
    %464 = arith.mulf %463, %460 : vector<4x32xf32>
    %465 = arith.mulf %461, %406 : vector<4x32xf32>
    %466 = arith.addf %464, %465 : vector<4x32xf32>
    %cst_110 = arith.constant dense<0.000000e+00> : vector<4x96xf32>
    %467 = tpu.matmul %466, %6, %cst_110 {dimension_numbers = #tpu.dot_dimension_numbers<[1], [0], [0], [1], [0, 0, 1, 1], [], []>} : vector<4x32xf32>, vector<32x96xf32>, vector<4x96xf32> -> vector<4x96xf32>
    %468 = arith.addf %467, %7 : vector<4x96xf32>
    %cst_111 = arith.constant dense<0.000000e+00> : vector<4x96xf32>
    %469 = tpu.matmul %430, %8, %cst_111 {dimension_numbers = #tpu.dot_dimension_numbers<[1], [0], [0], [1], [0, 0, 1, 1], [], []>} : vector<4x32xf32>, vector<32x96xf32>, vector<4x96xf32> -> vector<4x96xf32>
    %470 = vector.extract_strided_slice %468 {offsets = [0, 0], sizes = [4, 64], strides = [1, 1]} : vector<4x96xf32> to vector<4x64xf32>
    %471 = vector.extract_strided_slice %469 {offsets = [0, 0], sizes = [4, 64], strides = [1, 1]} : vector<4x96xf32> to vector<4x64xf32>
    %472 = arith.addf %470, %471 : vector<4x64xf32>
    %473 = arith.negf %472 : vector<4x64xf32>
    %474 = math.exp %473 : vector<4x64xf32>
    %cst_112 = arith.constant 1.000000e+00 : f32
    %475 = vector.broadcast %cst_112 : f32 to vector<4x64xf32>
    %476 = arith.addf %475, %474 : vector<4x64xf32>
    %477 = arith.divf %475, %476 : vector<4x64xf32>
    %478 = vector.extract_strided_slice %468 {offsets = [0, 64], sizes = [4, 32], strides = [1, 1]} : vector<4x96xf32> to vector<4x32xf32>
    %479 = vector.extract_strided_slice %477 {offsets = [0, 0], sizes = [4, 32], strides = [1, 1]} : vector<4x64xf32> to vector<4x32xf32>
    %480 = vector.extract_strided_slice %469 {offsets = [0, 64], sizes = [4, 32], strides = [1, 1]} : vector<4x96xf32> to vector<4x32xf32>
    %481 = arith.addf %480, %9 : vector<4x32xf32>
    %482 = arith.mulf %479, %481 : vector<4x32xf32>
    %483 = arith.addf %478, %482 : vector<4x32xf32>
    %484 = math.tanh %483 : vector<4x32xf32>
    %485 = vector.extract_strided_slice %477 {offsets = [0, 32], sizes = [4, 32], strides = [1, 1]} : vector<4x64xf32> to vector<4x32xf32>
    %cst_113 = arith.constant 1.000000e+00 : f32
    %486 = vector.broadcast %cst_113 : f32 to vector<4x32xf32>
    %487 = arith.subf %486, %485 : vector<4x32xf32>
    %488 = arith.mulf %487, %484 : vector<4x32xf32>
    %489 = arith.mulf %485, %430 : vector<4x32xf32>
    %490 = arith.addf %488, %489 : vector<4x32xf32>
    %cst_114 = arith.constant dense<0.000000e+00> : vector<4x2xf32>
    %491 = tpu.matmul %490, %10, %cst_114 {dimension_numbers = #tpu.dot_dimension_numbers<[1], [0], [0], [1], [0, 0, 1, 1], [], []>} : vector<4x32xf32>, vector<32x2xf32>, vector<4x2xf32> -> vector<4x2xf32>
    %492 = arith.addf %491, %11 : vector<4x2xf32>
    %493 = math.tanh %492 : vector<4x2xf32>
    %c0_115 = arith.constant 0 : index
    %c14 = arith.constant 14 : index
    %494 = vector.load %arg10[%c0_115, %c14] : memref<4x16xf32, #tpu.memory_space<vmem>>, vector<4x2xf32>
    tpu.vector_store %arg10[%c0_115, %c14], %493 {strides = array<i32>} : memref<4x16xf32, #tpu.memory_space<vmem>>, vector<4x2xf32>,
    return
  }
}

</mosaic_0001>

<bundles_post_ra>
// kernel: _lambda_.1
= control target key start
LH: loop header
LB: loop body
LE: loop exit
PB: predicated region body
PF: predicated region fallthrough
CT: control target
= control target key end

     0   :  { %v3706_v0 = vmov 0.0   ;;  %vm3707_vm0 = vmmov 0   ;;  %s3708_s21 = smov 64   ;;  %s3709_s25 = smov 96   ;;  %vm61_vm1 = vcmask 261120   ;;  %vm418_vm2 = vcmask 11264   ;;  %s4647_s2 = inlined_call_operand.vmem [shape: f32[32,96], index: 2, kind: input, shape index: {}]   ;;  %s4648_s3 = inlined_call_operand.vmem [shape: f32[4,32], index: 3, kind: input, shape index: {}]   ;;  %s4649_s1 = inlined_call_operand.vmem [shape: f32[2,4,96], index: 1, kind: input, shape index: {}]   ;;  %s4650_s0 = inlined_call_operand.vmem [shape: f32[8,4,96], index: 0, kind: input, shape index: {}]   ;;  %s4651_s6 = inlined_call_operand.vmem [shape: f32[32,96], index: 6, kind: input, shape index: {}]   ;;  %s4652_s4 = inlined_call_operand.vmem [shape: f32[32,96], index: 4, kind: input, shape index: {}]   ;;  %s4653_s7 = inlined_call_operand.vmem [shape: f32[4,32], index: 7, kind: input, shape index: {}]   ;;  %s4654_s5 = inlined_call_operand.vmem [shape: f32[4,96], index: 5, kind: input, shape index: {}]   ;;  %s4655_s8 = inlined_call_operand.vmem [shape: f32[32,2], index: 8, kind: input, shape index: {}]   ;;  %s4656_s9 = inlined_call_operand.vmem [shape: f32[4,2], index: 9, kind: input, shape index: {}]   ;;  %s4657_s10 = inlined_call_operand.vmem [shape: f32[4,16], index: 10, kind: output, shape index: {}]  }
   0x1   :  { %3194 = vmatprep.subr.mxu0 %v3706_v0  ;;  %v3778_v1 = vld [vmem:[%s4647_s2 + $0x18] sm:$0xff]  ;;  %v3783_v2 = vld [vmem:[%s4647_s2 + $0x10] sm:$0xff]  ;;  %3202 = vmatprep.mubr.msk.f32.mxu0 %vm3707_vm0, %v3706_v0  ;;  %v42_v3 = vld [vmem:[%s4648_s3] sm:$0xf]  ;;  %s3714_s28 = smov 10   ;;  %vm784_vm3 = vcmask 27664  }
   0x2   :  { %3195 = vmatpush3.msra.mxu0 %v3778_v1  ;;  %3205 = vmatprep.subr.mxu1 %v3706_v0  ;;  %v3796_v4 = vld [vmem:[%s4647_s2 + $0x8] sm:$0xff]  ;;  %v3806_v5 = vld [vmem:[%s4647_s2] sm:$0xff]  ;;  %v3838_v24 = vld [vmem:[%s4651_s6 + $0x18] sm:$0xff]  ;;  %s3715_s30 = smov 4   ;;  %s3716_s11 = smov 8   ;;  %vm1149_vm4 = vcmask 44064  }
   0x3   :  { %3196 = vmatprep.subr.mxu0 %v3706_v0  ;;  %143 = vrot.lane.b32.xlu0 %v42_v3, %s3708_s21  ;;  %v3822_v10 = vld [vmem:[%s4649_s1] sm:$0xf]  ;;  %v3827_v11 = vld [vmem:[%s4649_s1 + $0x4] sm:$0xf]  ;;  %v3843_v25 = vld [vmem:[%s4651_s6 + $0x10] sm:$0xff]  ;;  %vm1514_vm5 = vcmask 60464  }
   0x4   :  { %3197 = vmatpush3.msra.mxu0 %v3783_v2  ;;  %3213 = vmatprep.mubr.msk.f32.mxu1 %vm3707_vm0, %v3706_v0  ;;  %v58_v12 = vadd.f32 %v3827_v11, %v3822_v10  ;;  %v59_v13 = vld [vmem:[%s4650_s0] sm:$0xf]  ;;  %v3849_v26 = vld [vmem:[%s4652_s4 + $0x18] sm:$0xff]  ;;  %v3854_v27 = vld [vmem:[%s4652_s4 + $0x10] sm:$0xff]  ;;  %vm1879_vm6 = vcmask 76864   ;;  %vm2244_vm7 = vcmask 93264  }
   0x5   :  { %3198 = vmatprep.subr.mxu0 %v3706_v0  ;;  %v3860_v28 = vld [vmem:[%s4651_s6 + $0x8] sm:$0xff]  ;;  %3206 = vmatpush3.msra.mxu1 %v3849_v26  ;;  %v3874_v30 = vld [vmem:[%s4651_s6] sm:$0xff]  ;;  %v3941_v59 = vld [vmem:[%s4655_s8 + $0x18] sm:$0xff]  ;;  %vm2609_vm8 = vcmask 109664   ;;  %s3718_s18 = smov 14   ;;  %vm2974_vm9 = vcmask 126064  }
   0x6   :  { %3199 = vmatpush3.msra.mxu0 %v3796_v4  ;;  %v60_v14 = vadd.f32 %v59_v13, %v58_v12  ;;  %3207 = vmatprep.subr.mxu1 %v3706_v0  ;;  %v3868_v29 = vld [vmem:[%s4652_s4 + $0x8] sm:$0xff]  ;;  %v3884_v31 = vld [vmem:[%s4652_s4] sm:$0xff]  ;;  %v3946_v60 = vld [vmem:[%s4655_s8 + $0x10] sm:$0xff] }
   0x7   :  { %3200 = vmatprep.subr.mxu0 %v3706_v0  ;;  %3208 = vmatpush3.msra.mxu1 %v3854_v27  ;;  %v52_v33 = vld [vmem:[%s4653_s7] sm:$0xf]  ;;  %v3953_v61 = vld [vmem:[%s4655_s8 + $0x8] sm:$0xff]  ;;  %s3713_s7 = smov 6  }
   0x8   :  { %3201 = vmatpush3.msra.mxu0 %v3806_v5  ;;  %3209 = vmatprep.subr.mxu1 %v3706_v0  ;;  %v3932_v44 = vld [vmem:[%s4654_s5] sm:$0xf] }
   0x9   :  { %3203 = vmatmul.mubr.f32.vlgmr.msra.gmra.mxu0 %v3706_v0  ;;  %3216 = vmatprep.subr.mxu0 %v3706_v0  ;;  %v3960_v62 = vld [vmem:[%s4655_s8] sm:$0xff] }
   0xa   :  { %3224 = vmatprep.mubr.msk.f32.mxu0 %vm3707_vm0, %v3706_v0  ;;  %3217 = vmatpush3.msra.mxu0 %v3838_v24 }
   0xb   :  { %3218 = vmatprep.subr.mxu0 %v3706_v0  ;;  %3210 = vmatpush3.msra.mxu1 %v3868_v29 }
   0xc   :  { %3219 = vmatpush3.msra.mxu0 %v3843_v25  ;;  %3211 = vmatprep.subr.mxu1 %v3706_v0 }
   0xd   :  { %3220 = vmatprep.subr.mxu0 %v3706_v0  ;;  %3212 = vmatpush3.msra.mxu1 %v3884_v31 }
   0xe   :  { %3221 = vmatpush3.msra.mxu0 %v3860_v28  ;;  %3227 = vmatprep.subr.mxu1 %v3706_v0 }
   0xf   :  { %3222 = vmatprep.subr.mxu0 %v3706_v0 }
  0x10   :  { %3223 = vmatpush3.msra.mxu0 %v3874_v30 }
  0x11   :  { %3225 = vmatmul.mubr.f32.vlgmr.msra.gmra.mxu0 %v3706_v0  ;;  %3238 = vmatprep.subr.mxu0 %v3706_v0 }
  0x12   :  { %3239 = vmatpush3.msra.mxu0 %v3778_v1  ;;  %3246 = vmatprep.mubr.msk.f32.mxu0 %vm3707_vm0, %v3706_v0 }
  0x13   :  { %3240 = vmatprep.subr.mxu0 %v3706_v0 }
  0x14   :  { %3241 = vmatpush3.msra.mxu0 %v3783_v2 }
  0x15   :  { %3242 = vmatprep.subr.mxu0 %v3706_v0 }
  0x16   :  { %3243 = vmatpush3.msra.mxu0 %v3796_v4 }
  0x17   :  { %3244 = vmatprep.subr.mxu0 %v3706_v0 }
  0x18   :  { %3245 = vmatpush3.msra.mxu0 %v3806_v5 }
  0x19   :  { %3260 = vmatprep.subr.mxu0 %v3706_v0 }
  0x75   :  { %v3815_v6 = vpop.permute.xlu0 %143 }
  0xc9   :  { %v131_v7 = vpop.f32.mrf.mxu0 }
  0xca   :  { %v146_v8 = vadd.f32 %v3815_v6, %v131_v7  ;;  %v135_v15 = vadd.f32 %v131_v7, %v60_v14 }
  0xcb   :  { %v3204_v9 = vpop.f32.mrf.mxu0 }
  0xcc   :  { %148 = vrot.lane.b32.xlu0 %v146_v8, %s3708_s21  ;;  %v2981_v16 = vmul.f32 -1.442695, %v135_v15  ;;  %v3711_v15 = vmov 0  }
  0xcd   :  { %3559 = vset.pattern.permute.xlu0 %v3711_v15 }
  0xce   :  { %3574 = vpow2.f32 %v2981_v16  ;;  %v3998_v16 = vld [vmem:[%s4656_s9] sm:$0xf] }
  0xd1   :  { %v307_v40 = vpop.f32.mrf.mxu0 }
  0xd3   :  { %v3226_v42 = vpop.f32.mrf.mxu0 }
  0xdb   :  { %v3575_v17 = vpop.eup %3574 }
  0xdc   :  { %v139_v18 = vadd.f32 1.0, %v3575_v17 }
  0xde   :  { %3576 = vrcp.f32 %v139_v18 }
  0xeb   :  { %v3577_v19 = vpop.eup %3576 }
  0xec   :  { %v158_v34 = vsub.f32 1.0, %v3577_v19  ;;  %v164_v36 = vmul.f32 0.0, %v3577_v19 }
 0x13e   :  { %v149_v20 = vpop.permute.xlu0 %148 }
 0x13f   :  { %v151_v21 = vmul.f32 %v3577_v19, %v149_v20 }
 0x141   :  { %153 = vrot.lane.b32.xlu1 %v151_v21, %s3708_s21 }
 0x1b3   :  { %v154_v22 = vpop.permute.xlu1 %153 }
 0x1b4   :  { %v156_v23 = vadd.f32 %v154_v22, %v60_v14  ;;  %v3710_v14 = vmov 1  }
 0x1b5   :  { %3560 = vset.pattern.permute.xlu1 %v3710_v14 }
 0x1b6   :  { %3578 = vtanh.f32 %v156_v23 }
 0x1c3   :  { %v3579_v32 = vpop.eup %3578 }
 0x1c4   :  { %160 = vrot.lane.b32.xlu1 %v3579_v32, %s3709_s25 }
 0x1c8   :  { %319 = vrot.lane.b32.xlu1 %v52_v33, %s3708_s21 }
 0x236   :  { %v161_v35 = vpop.permute.xlu1 %160 }
 0x237   :  { %v163_v37 = vmul.f32 %v161_v35, %v158_v34 }
 0x239   :  { %v3907_v38 = vadd.f32 %v164_v36, %v163_v37  ;;  %v2985_v36 = vld [vmem:[%s4650_s0 + $0x4] sm:$0xf] }
 0x23a   :  { %v3911_v39 = vpop.permute.xlu1 %319 }
 0x23b   :  { %167 = vrot.lane.b32.xlu0 %v3907_v38, %s3709_s25  ;;  %v322_v41 = vadd.f32 %v3911_v39, %v307_v40 }
 0x23f   :  { %324 = vrot.lane.b32.xlu0 %v322_v41, %s3708_s21 }
 0x2ad   :  { %v168_v43 = vpop.permute.xlu0 %167 }
 0x2ae   :  { %3214 = vmatmul.mubr.msk.f32.vlgmr.msra.gmra.mxu1 %vm61_vm1, %v168_v43  ;;  %3247 = vmatmul.mubr.msk.f32.vlgmr.msra.gmra.mxu0 %vm61_vm1, %v168_v43 }
 0x2af   :  { %3261 = vmatpush3.msra.mxu0 %v3838_v24  ;;  %3235 = vmatprep.mubr.msk.f32.mxu1 %vm3707_vm0, %v3706_v0 }
 0x2b0   :  { %3262 = vmatprep.subr.mxu0 %v3706_v0  ;;  %3268 = vmatprep.mubr.msk.f32.mxu0 %vm3707_vm0, %v3706_v0 }
 0x2b1   :  { %3263 = vmatpush3.msra.mxu0 %v3843_v25  ;;  %v325_v54 = vpop.permute.xlu0 %324  ;;  %3228 = vmatpush3.msra.mxu1 %v3941_v59 }
 0x2b2   :  { %3264 = vmatprep.subr.mxu0 %v3706_v0  ;;  %3229 = vmatprep.subr.mxu1 %v3706_v0 }
 0x2b3   :  { %3265 = vmatpush3.msra.mxu0 %v3860_v28  ;;  %3230 = vmatpush3.msra.mxu1 %v3946_v60 }
 0x2b4   :  { %3266 = vmatprep.subr.mxu0 %v3706_v0  ;;  %3231 = vmatprep.subr.mxu1 %v3706_v0 }
 0x2b5   :  { %3267 = vmatpush3.msra.mxu0 %v3874_v30  ;;  %3232 = vmatpush3.msra.mxu1 %v3953_v61 }
 0x2b6   :  { %3282 = vmatprep.subr.mxu0 %v3706_v0  ;;  %3233 = vmatprep.subr.mxu1 %v3706_v0 }
 0x2b7   :  { %3234 = vmatpush3.msra.mxu1 %v3960_v62 }
 0x2b8   :  { %3249 = vmatprep.subr.mxu1 %v3706_v0 }
 0x36e   :  { %v237_v45 = vpop.f32.mrf.mxu1  ;;  %v3934_v46 = vpop.f32.mrf.mxu0 }
 0x36f   :  { %v238_v47 = vadd.f32 %v237_v45, %v3932_v44  ;;  %v512_v23 = vadd.f32 %v3934_v46, %v3815_v6 }
 0x370   :  { %v3215_v48 = vpop.f32.mrf.mxu1  ;;  %v3248_v49 = vpop.f32.mrf.mxu0 }
 0x371   :  { %v311_v50 = vadd.f32 %v307_v40, %v238_v47 }
 0x373   :  { %v2983_v51 = vmul.f32 -1.442695, %v311_v50 }
 0x375   :  { %3580 = vpow2.f32 %v2983_v51 }
 0x382   :  { %v3581_v52 = vpop.eup %3580 }
 0x383   :  { %v315_v53 = vadd.f32 1.0, %v3581_v52 }
 0x385   :  { %3582 = vrcp.f32 %v315_v53 }
 0x392   :  { %v3583_v55 = vpop.eup %3582 }
 0x393   :  { %v327_v56 = vmul.f32 %v3583_v55, %v325_v54  ;;  %v334_v3 = vsub.f32 1.0, %v3583_v55  ;;  %v340_v8 = vmul.f32 0.0, %v3583_v55 }
 0x395   :  { %329 = vrot.lane.b32.xlu1 %v327_v56, %s3708_s21 }
 0x407   :  { %v330_v57 = vpop.permute.xlu1 %329 }
 0x408   :  { %v332_v58 = vadd.f32 %v330_v57, %v238_v47 }
 0x40a   :  { %3584 = vtanh.f32 %v332_v58 }
 0x417   :  { %v3585_v63 = vpop.eup %3584 }
 0x418   :  { %336 = vrot.lane.b32.xlu0 %v3585_v63, %s3709_s25 }
 0x48a   :  { %v337_v7 = vpop.permute.xlu0 %336 }
 0x48b   :  { %v339_v9 = vmul.f32 %v337_v7, %v334_v3 }
 0x48d   :  { %v3967_v12 = vadd.f32 %v340_v8, %v339_v9 }
 0x48f   :  { %343 = vrot.lane.b32.xlu1 %v3967_v12, %s3709_s25 }
 0x501   :  { %v344_v13 = vpop.permute.xlu1 %343 }
 0x502   :  { %3236 = vmatmul.mubr.msk.f32.vlgmr.msra.gmra.mxu1 %vm61_vm1, %v344_v13  ;;  %3269 = vmatmul.mubr.msk.f32.vlgmr.msra.gmra.mxu0 %vm61_vm1, %v344_v13 }
 0x503   :  { %3250 = vmatpush3.msra.mxu1 %v3849_v26  ;;  %3283 = vmatpush3.msra.mxu0 %v3778_v1 }
 0x504   :  { %3251 = vmatprep.subr.mxu1 %v3706_v0  ;;  %3284 = vmatprep.subr.mxu0 %v3706_v0 }
 0x505   :  { %3252 = vmatpush3.msra.mxu1 %v3854_v27  ;;  %3285 = vmatpush3.msra.mxu0 %v3783_v2 }
 0x506   :  { %3253 = vmatprep.subr.mxu1 %v3706_v0  ;;  %3286 = vmatprep.subr.mxu0 %v3706_v0 }
 0x507   :  { %3254 = vmatpush3.msra.mxu1 %v3868_v29  ;;  %3287 = vmatpush3.msra.mxu0 %v3796_v4 }
 0x508   :  { %3255 = vmatprep.subr.mxu1 %v3706_v0  ;;  %3288 = vmatprep.subr.mxu0 %v3706_v0 }
 0x509   :  { %3256 = vmatpush3.msra.mxu1 %v3884_v31  ;;  %3257 = vmatprep.mubr.msk.f32.mxu1 %vm3707_vm0, %v3706_v0 }
 0x50a   :  { %3289 = vmatpush3.msra.mxu0 %v3806_v5  ;;  %3290 = vmatprep.mubr.msk.f32.mxu0 %vm3707_vm0, %v3706_v0 }
 0x50b   :  { %3271 = vmatprep.subr.mxu1 %v3706_v0  ;;  %3304 = vmatprep.subr.mxu0 %v3706_v0 }
 0x5c2   :  { %v413_v17 = vpop.f32.mrf.mxu1  ;;  %v4000_v18 = vpop.f32.mrf.mxu0 }
 0x5c3   :  { %v414_v19 = vadd.f32 %v413_v17, %v3998_v16  ;;  %v684_v53 = vadd.f32 %v4000_v18, %v3911_v39 }
 0x5c4   :  { %v3237_v20 = vpop.f32.mrf.mxu1  ;;  %v3270_v21 = vpop.f32.mrf.mxu0 }
 0x5c5   :  { %3586 = vtanh.f32 %v414_v19 }
 0x5d2   :  { %v3587_v22 = vpop.eup %3586 }
 0x5d3   :  { %427 = vperm.xlu1 %3560, %v3587_v22   ;;  %422 = vperm.xlu0 %3559, %v3587_v22   ;;  %419 = vst.msk [vmem:[%s4657_s10] sm:$0xf] %vm418_vm2, %v3587_v22 }
 0x5d7   :  { %514 = vrot.lane.b32.xlu1 %v512_v23, %s3708_s21  ;;  %3562 = vset.pattern.permute.xlu0 %v3710_v14 }
 0x5d8   :  { %3561 = vset.pattern.permute.xlu1 %v3711_v15 }
 0x64e   :  { %v428_v32 = vpop.permute.xlu1 %427  ;;  %v423_v33 = vpop.permute.xlu0 %422 }
 0x64f   :  { %v430_v34 = vmul.f32 %v3827_v11, %v428_v32  ;;  %v425_v35 = vmul.f32 %v423_v33, %v3822_v10 }
 0x651   :  { %v431_v37 = vadd.f32 %v430_v34, %v425_v35 }
 0x652   :  { %v515_v48 = vpop.permute.xlu1 %514 }
 0x653   :  { %v434_v40 = vadd.f32 %v2985_v36, %v431_v37 }
 0x655   :  { %v505_v41 = vadd.f32 %v3934_v46, %v434_v40 }
 0x657   :  { %v2987_v42 = vmul.f32 -1.442695, %v505_v41 }
 0x659   :  { %3588 = vpow2.f32 %v2987_v42 }
 0x666   :  { %v3589_v43 = vpop.eup %3588 }
 0x667   :  { %v509_v45 = vadd.f32 1.0, %v3589_v43 }
 0x669   :  { %3590 = vrcp.f32 %v509_v45 }
 0x676   :  { %v3591_v47 = vpop.eup %3590 }
 0x677   :  { %v517_v49 = vmul.f32 %v3591_v47, %v515_v48  ;;  %v524_v46 = vsub.f32 1.0, %v3591_v47  ;;  %v530_v55 = vmul.f32 %v3591_v47, %v3907_v38 }
 0x679   :  { %519 = vrot.lane.b32.xlu0 %v517_v49, %s3708_s21 }
 0x6eb   :  { %v520_v50 = vpop.permute.xlu0 %519 }
 0x6ec   :  { %v522_v51 = vadd.f32 %v520_v50, %v434_v40 }
 0x6ee   :  { %3592 = vtanh.f32 %v522_v51 }
 0x6fb   :  { %v3593_v52 = vpop.eup %3592 }
 0x6fc   :  { %526 = vrot.lane.b32.xlu1 %v3593_v52, %s3709_s25 }
 0x700   :  { %686 = vrot.lane.b32.xlu1 %v684_v53, %s3708_s21  ;;  %v2992_v53 = vld [vmem:[%s4650_s0 + $0x8] sm:$0xf] }
 0x76e   :  { %v527_v54 = vpop.permute.xlu1 %526 }
 0x76f   :  { %v529_v56 = vmul.f32 %v527_v54, %v524_v46 }
 0x771   :  { %v4023_v57 = vadd.f32 %v530_v55, %v529_v56 }
 0x772   :  { %v687_v21 = vpop.permute.xlu1 %686 }
 0x773   :  { %533 = vrot.lane.b32.xlu0 %v4023_v57, %s3709_s25 }
 0x7e5   :  { %v534_v58 = vpop.permute.xlu0 %533 }
 0x7e6   :  { %3258 = vmatmul.mubr.msk.f32.vlgmr.msra.gmra.mxu1 %vm61_vm1, %v534_v58  ;;  %3291 = vmatmul.mubr.msk.f32.vlgmr.msra.gmra.mxu0 %vm61_vm1, %v534_v58 }
 0x7e7   :  { %3272 = vmatpush3.msra.mxu1 %v3941_v59  ;;  %3305 = vmatpush3.msra.mxu0 %v3838_v24 }
 0x7e8   :  { %3273 = vmatprep.subr.mxu1 %v3706_v0  ;;  %3306 = vmatprep.subr.mxu0 %v3706_v0 }
 0x7e9   :  { %3274 = vmatpush3.msra.mxu1 %v3946_v60  ;;  %3307 = vmatpush3.msra.mxu0 %v3843_v25 }
 0x7ea   :  { %3275 = vmatprep.subr.mxu1 %v3706_v0  ;;  %3308 = vmatprep.subr.mxu0 %v3706_v0 }
 0x7eb   :  { %3276 = vmatpush3.msra.mxu1 %v3953_v61  ;;  %3309 = vmatpush3.msra.mxu0 %v3860_v28 }
 0x7ec   :  { %3277 = vmatprep.subr.mxu1 %v3706_v0  ;;  %3310 = vmatprep.subr.mxu0 %v3706_v0 }
 0x7ed   :  { %3278 = vmatpush3.msra.mxu1 %v3960_v62  ;;  %3279 = vmatprep.mubr.msk.f32.mxu1 %vm3707_vm0, %v3706_v0 }
 0x7ee   :  { %3311 = vmatpush3.msra.mxu0 %v3874_v30  ;;  %3312 = vmatprep.mubr.msk.f32.mxu0 %vm3707_vm0, %v3706_v0 }
 0x7ef   :  { %3293 = vmatprep.subr.mxu1 %v3706_v0  ;;  %3326 = vmatprep.subr.mxu0 %v3706_v0 }
 0x8a6   :  { %v603_v38 = vpop.f32.mrf.mxu1  ;;  %v4049_v63 = vpop.f32.mrf.mxu0 }
 0x8a7   :  { %v604_v3 = vadd.f32 %v603_v38, %v3932_v44  ;;  %v877_v48 = vadd.f32 %v4049_v63, %v3815_v6 }
 0x8a8   :  { %v3259_v7 = vpop.f32.mrf.mxu1  ;;  %v3292_v8 = vpop.f32.mrf.mxu0 }
 0x8a9   :  { %v677_v9 = vadd.f32 %v4000_v18, %v604_v3 }
 0x8ab   :  { %v2990_v13 = vmul.f32 -1.442695, %v677_v9 }
 0x8ad   :  { %3594 = vpow2.f32 %v2990_v13 }
 0x8ba   :  { %v3595_v17 = vpop.eup %3594 }
 0x8bb   :  { %v681_v19 = vadd.f32 1.0, %v3595_v17 }
 0x8bd   :  { %3596 = vrcp.f32 %v681_v19 }
 0x8ca   :  { %v3597_v20 = vpop.eup %3596 }
 0x8cb   :  { %v689_v22 = vmul.f32 %v3597_v20, %v687_v21  ;;  %v696_v34 = vsub.f32 1.0, %v3597_v20  ;;  %v702_v18 = vmul.f32 %v3597_v20, %v3967_v12 }
 0x8cd   :  { %691 = vrot.lane.b32.xlu0 %v689_v22, %s3708_s21 }
 0x93f   :  { %v692_v23 = vpop.permute.xlu0 %691 }
 0x940   :  { %v694_v32 = vadd.f32 %v692_v23, %v604_v3 }
 0x942   :  { %3598 = vtanh.f32 %v694_v32 }
 0x94f   :  { %v3599_v33 = vpop.eup %3598 }
 0x950   :  { %698 = vrot.lane.b32.xlu1 %v3599_v33, %s3709_s25 }
 0x9c2   :  { %v699_v35 = vpop.permute.xlu1 %698 }
 0x9c3   :  { %v701_v36 = vmul.f32 %v699_v35, %v696_v34 }
 0x9c5   :  { %v4056_v37 = vadd.f32 %v702_v18, %v701_v36 }
 0x9c7   :  { %705 = vrot.lane.b32.xlu0 %v4056_v37, %s3709_s25 }
 0xa39   :  { %v706_v40 = vpop.permute.xlu0 %705 }
 0xa3a   :  { %3280 = vmatmul.mubr.msk.f32.vlgmr.msra.gmra.mxu1 %vm61_vm1, %v706_v40  ;;  %3313 = vmatmul.mubr.msk.f32.vlgmr.msra.gmra.mxu0 %vm61_vm1, %v706_v40 }
 0xa3b   :  { %3294 = vmatpush3.msra.mxu1 %v3849_v26  ;;  %3327 = vmatpush3.msra.mxu0 %v3778_v1 }
 0xa3c   :  { %3295 = vmatprep.subr.mxu1 %v3706_v0  ;;  %3328 = vmatprep.subr.mxu0 %v3706_v0 }
 0xa3d   :  { %3296 = vmatpush3.msra.mxu1 %v3854_v27  ;;  %3329 = vmatpush3.msra.mxu0 %v3783_v2 }
 0xa3e   :  { %3297 = vmatprep.subr.mxu1 %v3706_v0  ;;  %3330 = vmatprep.subr.mxu0 %v3706_v0 }
 0xa3f   :  { %3298 = vmatpush3.msra.mxu1 %v3868_v29  ;;  %3331 = vmatpush3.msra.mxu0 %v3796_v4 }
 0xa40   :  { %3299 = vmatprep.subr.mxu1 %v3706_v0  ;;  %3332 = vmatprep.subr.mxu0 %v3706_v0 }
 0xa41   :  { %3300 = vmatpush3.msra.mxu1 %v3884_v31  ;;  %3301 = vmatprep.mubr.msk.f32.mxu1 %vm3707_vm0, %v3706_v0 }
 0xa42   :  { %3333 = vmatpush3.msra.mxu0 %v3806_v5  ;;  %3334 = vmatprep.mubr.msk.f32.mxu0 %vm3707_vm0, %v3706_v0 }
 0xa43   :  { %3315 = vmatprep.subr.mxu1 %v3706_v0  ;;  %3348 = vmatprep.subr.mxu0 %v3706_v0 }
 0xafa   :  { %v775_v12 = vpop.f32.mrf.mxu1  ;;  %v4082_v41 = vpop.f32.mrf.mxu0 }
 0xafb   :  { %v776_v42 = vadd.f32 %v775_v12, %v3998_v16  ;;  %v1049_v19 = vadd.f32 %v4082_v41, %v3911_v39 }
 0xafc   :  { %v3281_v43 = vpop.f32.mrf.mxu1  ;;  %v3314_v45 = vpop.f32.mrf.mxu0 }
 0xafd   :  { %3600 = vtanh.f32 %v776_v42 }
 0xb0a   :  { %v4085_v47 = vpop.eup %3600 }
 0xb0b   :  { %792 = vperm.xlu0 %3562, %v4085_v47   ;;  %787 = vperm.xlu1 %3561, %v4085_v47  }
 0xb0f   :  { %879 = vrot.lane.b32.xlu1 %v877_v48, %s3708_s21  ;;  %3563 = vset.pattern.permute.xlu0 %v3711_v15 }
 0xb10   :  { %3564 = vset.pattern.permute.xlu1 %v3710_v14 }
 0xb86   :  { %v793_v49 = vpop.permute.xlu0 %792  ;;  %v788_v50 = vpop.permute.xlu1 %787 }
 0xb87   :  { %v795_v51 = vmul.f32 %v3827_v11, %v793_v49  ;;  %v790_v52 = vmul.f32 %v788_v50, %v3822_v10 }
 0xb89   :  { %v796_v46 = vadd.f32 %v795_v51, %v790_v52 }
 0xb8a   :  { %v880_v7 = vpop.permute.xlu1 %879 }
 0xb8b   :  { %v799_v54 = vadd.f32 %v2992_v53, %v796_v46 }
 0xb8d   :  { %v870_v55 = vadd.f32 %v4049_v63, %v799_v54 }
 0xb8f   :  { %v2994_v56 = vmul.f32 -1.442695, %v870_v55 }
 0xb91   :  { %3602 = vpow2.f32 %v2994_v56 }
 0xb9e   :  { %v3603_v58 = vpop.eup %3602 }
 0xb9f   :  { %v874_v38 = vadd.f32 1.0, %v3603_v58 }
 0xba1   :  { %3604 = vrcp.f32 %v874_v38 }
 0xbae   :  { %v3605_v3 = vpop.eup %3604 }
 0xbaf   :  { %v882_v8 = vmul.f32 %v3605_v3, %v880_v7  ;;  %v889_v63 = vsub.f32 1.0, %v3605_v3  ;;  %v895_v21 = vmul.f32 %v3605_v3, %v4023_v57 }
 0xbb1   :  { %884 = vrot.lane.b32.xlu1 %v882_v8, %s3708_s21 }
 0xc23   :  { %v885_v9 = vpop.permute.xlu1 %884 }
 0xc24   :  { %v887_v13 = vadd.f32 %v885_v9, %v799_v54 }
 0xc26   :  { %3606 = vtanh.f32 %v887_v13 }
 0xc33   :  { %v3607_v17 = vpop.eup %3606 }
 0xc34   :  { %891 = vrot.lane.b32.xlu0 %v3607_v17, %s3709_s25 }
 0xc38   :  { %1051 = vrot.lane.b32.xlu0 %v1049_v19, %s3708_s21 }
 0xca6   :  { %v892_v20 = vpop.permute.xlu0 %891 }
 0xca7   :  { %v894_v22 = vmul.f32 %v892_v20, %v889_v63  ;;  %v2999_v63 = vld [vmem:[%s4650_s0 + $0xc] sm:$0xf] }
 0xca9   :  { %v4106_v23 = vadd.f32 %v895_v21, %v894_v22 }
 0xcaa   :  { %v1052_v45 = vpop.permute.xlu0 %1051 }
 0xcab   :  { %898 = vrot.lane.b32.xlu1 %v4106_v23, %s3709_s25 }
 0xd1d   :  { %v899_v32 = vpop.permute.xlu1 %898 }
 0xd1e   :  { %3302 = vmatmul.mubr.msk.f32.vlgmr.msra.gmra.mxu1 %vm61_vm1, %v899_v32  ;;  %3335 = vmatmul.mubr.msk.f32.vlgmr.msra.gmra.mxu0 %vm61_vm1, %v899_v32 }
 0xd1f   :  { %3316 = vmatpush3.msra.mxu1 %v3941_v59  ;;  %3349 = vmatpush3.msra.mxu0 %v3838_v24 }
 0xd20   :  { %3317 = vmatprep.subr.mxu1 %v3706_v0  ;;  %3350 = vmatprep.subr.mxu0 %v3706_v0 }
 0xd21   :  { %3318 = vmatpush3.msra.mxu1 %v3946_v60  ;;  %3351 = vmatpush3.msra.mxu0 %v3843_v25 }
 0xd22   :  { %3319 = vmatprep.subr.mxu1 %v3706_v0  ;;  %3352 = vmatprep.subr.mxu0 %v3706_v0 }
 0xd23   :  { %3320 = vmatpush3.msra.mxu1 %v3953_v61  ;;  %3353 = vmatpush3.msra.mxu0 %v3860_v28 }
 0xd24   :  { %3321 = vmatprep.subr.mxu1 %v3706_v0  ;;  %3354 = vmatprep.subr.mxu0 %v3706_v0 }
 0xd25   :  { %3322 = vmatpush3.msra.mxu1 %v3960_v62  ;;  %3323 = vmatprep.mubr.msk.f32.mxu1 %vm3707_vm0, %v3706_v0 }
 0xd26   :  { %3355 = vmatpush3.msra.mxu0 %v3874_v30  ;;  %3356 = vmatprep.mubr.msk.f32.mxu0 %vm3707_vm0, %v3706_v0 }
 0xd27   :  { %3337 = vmatprep.subr.mxu1 %v3706_v0  ;;  %3370 = vmatprep.subr.mxu0 %v3706_v0 }
 0xdde   :  { %v968_v57 = vpop.f32.mrf.mxu1  ;;  %v4132_v33 = vpop.f32.mrf.mxu0 }
 0xddf   :  { %v969_v34 = vadd.f32 %v968_v57, %v3932_v44  ;;  %v1242_v8 = vadd.f32 %v4132_v33, %v3815_v6 }
 0xde0   :  { %v3303_v35 = vpop.f32.mrf.mxu1  ;;  %v3336_v18 = vpop.f32.mrf.mxu0 }
 0xde1   :  { %v1042_v36 = vadd.f32 %v4082_v41, %v969_v34 }
 0xde3   :  { %v2997_v40 = vmul.f32 -1.442695, %v1042_v36 }
 0xde5   :  { %3608 = vpow2.f32 %v2997_v40 }
 0xdf2   :  { %v3609_v12 = vpop.eup %3608 }
 0xdf3   :  { %v1046_v42 = vadd.f32 1.0, %v3609_v12 }
 0xdf5   :  { %3610 = vrcp.f32 %v1046_v42 }
 0xe02   :  { %v3611_v43 = vpop.eup %3610 }
 0xe03   :  { %v1054_v48 = vmul.f32 %v3611_v43, %v1052_v45  ;;  %v1061_v52 = vsub.f32 1.0, %v3611_v43  ;;  %v1067_v41 = vmul.f32 %v3611_v43, %v4056_v37 }
 0xe05   :  { %1056 = vrot.lane.b32.xlu1 %v1054_v48, %s3708_s21 }
 0xe77   :  { %v1057_v49 = vpop.permute.xlu1 %1056 }
 0xe78   :  { %v1059_v50 = vadd.f32 %v1057_v49, %v969_v34 }
 0xe7a   :  { %3612 = vtanh.f32 %v1059_v50 }
 0xe87   :  { %v3613_v51 = vpop.eup %3612 }
 0xe88   :  { %1063 = vrot.lane.b32.xlu0 %v3613_v51, %s3709_s25 }
 0xefa   :  { %v1064_v53 = vpop.permute.xlu0 %1063 }
 0xefb   :  { %v1066_v46 = vmul.f32 %v1064_v53, %v1061_v52 }
 0xefd   :  { %v4139_v54 = vadd.f32 %v1067_v41, %v1066_v46 }
 0xeff   :  { %1070 = vrot.lane.b32.xlu1 %v4139_v54, %s3709_s25 }
 0xf71   :  { %v1071_v55 = vpop.permute.xlu1 %1070 }
 0xf72   :  { %3324 = vmatmul.mubr.msk.f32.vlgmr.msra.gmra.mxu1 %vm61_vm1, %v1071_v55  ;;  %3357 = vmatmul.mubr.msk.f32.vlgmr.msra.gmra.mxu0 %vm61_vm1, %v1071_v55 }
 0xf73   :  { %3338 = vmatpush3.msra.mxu1 %v3849_v26  ;;  %3371 = vmatpush3.msra.mxu0 %v3778_v1 }
 0xf74   :  { %3339 = vmatprep.subr.mxu1 %v3706_v0  ;;  %3372 = vmatprep.subr.mxu0 %v3706_v0 }
 0xf75   :  { %3340 = vmatpush3.msra.mxu1 %v3854_v27  ;;  %3373 = vmatpush3.msra.mxu0 %v3783_v2 }
 0xf76   :  { %3341 = vmatprep.subr.mxu1 %v3706_v0  ;;  %3374 = vmatprep.subr.mxu0 %v3706_v0 }
 0xf77   :  { %3342 = vmatpush3.msra.mxu1 %v3868_v29  ;;  %3375 = vmatpush3.msra.mxu0 %v3796_v4 }
 0xf78   :  { %3343 = vmatprep.subr.mxu1 %v3706_v0  ;;  %3376 = vmatprep.subr.mxu0 %v3706_v0 }
 0xf79   :  { %3344 = vmatpush3.msra.mxu1 %v3884_v31  ;;  %3345 = vmatprep.mubr.msk.f32.mxu1 %vm3707_vm0, %v3706_v0 }
 0xf7a   :  { %3377 = vmatpush3.msra.mxu0 %v3806_v5  ;;  %3378 = vmatprep.mubr.msk.f32.mxu0 %vm3707_vm0, %v3706_v0 }
 0xf7b   :  { %3359 = vmatprep.subr.mxu1 %v3706_v0  ;;  %3392 = vmatprep.subr.mxu0 %v3706_v0 }
0x1032   :  { %v1140_v37 = vpop.f32.mrf.mxu1  ;;  %v4165_v56 = vpop.f32.mrf.mxu0 }
0x1033   :  { %v1141_v58 = vadd.f32 %v1140_v37, %v3998_v16  ;;  %v1414_v43 = vadd.f32 %v4165_v56, %v3911_v39 }
0x1034   :  { %v3325_v38 = vpop.f32.mrf.mxu1  ;;  %v3358_v3 = vpop.f32.mrf.mxu0 }
0x1035   :  { %3614 = vtanh.f32 %v1141_v58 }
0x1042   :  { %v4168_v7 = vpop.eup %3614 }
0x1043   :  { %1157 = vperm.xlu1 %3564, %v4168_v7   ;;  %1152 = vperm.xlu0 %3563, %v4168_v7  }
0x1047   :  { %1244 = vrot.lane.b32.xlu1 %v1242_v8, %s3708_s21  ;;  %3566 = vset.pattern.permute.xlu0 %v3710_v14 }
0x1048   :  { %3565 = vset.pattern.permute.xlu1 %v3711_v15 }
0x10be   :  { %v1158_v9 = vpop.permute.xlu1 %1157  ;;  %v1153_v13 = vpop.permute.xlu0 %1152 }
0x10bf   :  { %v1160_v17 = vmul.f32 %v3827_v11, %v1158_v9  ;;  %v1155_v19 = vmul.f32 %v1153_v13, %v3822_v10 }
0x10c1   :  { %v1161_v20 = vadd.f32 %v1160_v17, %v1155_v19 }
0x10c2   :  { %v1245_v18 = vpop.permute.xlu1 %1244 }
0x10c3   :  { %v1164_v21 = vadd.f32 %v2999_v63, %v1161_v20 }
0x10c5   :  { %v1235_v22 = vadd.f32 %v4132_v33, %v1164_v21 }
0x10c7   :  { %v3001_v32 = vmul.f32 -1.442695, %v1235_v22  ;;  %v3006_v22 = vld [vmem:[%s4650_s0 + $0x10] sm:$0xf] }
0x10c9   :  { %3616 = vpow2.f32 %v3001_v32 }
0x10d6   :  { %v3617_v57 = vpop.eup %3616 }
0x10d7   :  { %v1239_v34 = vadd.f32 1.0, %v3617_v57 }
0x10d9   :  { %3618 = vrcp.f32 %v1239_v34 }
0x10e6   :  { %v3619_v35 = vpop.eup %3618 }
0x10e7   :  { %v1247_v36 = vmul.f32 %v3619_v35, %v1245_v18  ;;  %v1254_v33 = vsub.f32 1.0, %v3619_v35  ;;  %v1260_v48 = vmul.f32 %v3619_v35, %v4106_v23 }
0x10e9   :  { %1249 = vrot.lane.b32.xlu0 %v1247_v36, %s3708_s21 }
0x115b   :  { %v1250_v40 = vpop.permute.xlu0 %1249 }
0x115c   :  { %v1252_v12 = vadd.f32 %v1250_v40, %v1164_v21 }
0x115e   :  { %3620 = vtanh.f32 %v1252_v12 }
0x116b   :  { %v3621_v42 = vpop.eup %3620 }
0x116c   :  { %1256 = vrot.lane.b32.xlu1 %v3621_v42, %s3709_s25 }
0x1170   :  { %1416 = vrot.lane.b32.xlu1 %v1414_v43, %s3708_s21 }
0x11de   :  { %v1257_v45 = vpop.permute.xlu1 %1256 }
0x11df   :  { %v1259_v49 = vmul.f32 %v1257_v45, %v1254_v33 }
0x11e1   :  { %v4189_v50 = vadd.f32 %v1260_v48, %v1259_v49 }
0x11e2   :  { %v1417_v37 = vpop.permute.xlu1 %1416 }
0x11e3   :  { %1263 = vrot.lane.b32.xlu0 %v4189_v50, %s3709_s25 }
0x1255   :  { %v1264_v51 = vpop.permute.xlu0 %1263 }
0x1256   :  { %3346 = vmatmul.mubr.msk.f32.vlgmr.msra.gmra.mxu1 %vm61_vm1, %v1264_v51  ;;  %3379 = vmatmul.mubr.msk.f32.vlgmr.msra.gmra.mxu0 %vm61_vm1, %v1264_v51 }
0x1257   :  { %3360 = vmatpush3.msra.mxu1 %v3941_v59  ;;  %3393 = vmatpush3.msra.mxu0 %v3838_v24 }
0x1258   :  { %3361 = vmatprep.subr.mxu1 %v3706_v0  ;;  %3394 = vmatprep.subr.mxu0 %v3706_v0 }
0x1259   :  { %3362 = vmatpush3.msra.mxu1 %v3946_v60  ;;  %3395 = vmatpush3.msra.mxu0 %v3843_v25 }
0x125a   :  { %3363 = vmatprep.subr.mxu1 %v3706_v0  ;;  %3396 = vmatprep.subr.mxu0 %v3706_v0 }
0x125b   :  { %3364 = vmatpush3.msra.mxu1 %v3953_v61  ;;  %3397 = vmatpush3.msra.mxu0 %v3860_v28 }
0x125c   :  { %3365 = vmatprep.subr.mxu1 %v3706_v0  ;;  %3398 = vmatprep.subr.mxu0 %v3706_v0 }
0x125d   :  { %3366 = vmatpush3.msra.mxu1 %v3960_v62  ;;  %3367 = vmatprep.mubr.msk.f32.mxu1 %vm3707_vm0, %v3706_v0 }
0x125e   :  { %3399 = vmatpush3.msra.mxu0 %v3874_v30  ;;  %3400 = vmatprep.mubr.msk.f32.mxu0 %vm3707_vm0, %v3706_v0 }
0x125f   :  { %3381 = vmatprep.subr.mxu1 %v3706_v0  ;;  %3414 = vmatprep.subr.mxu0 %v3706_v0 }
0x1316   :  { %v1333_v24 = vpop.f32.mrf.mxu1  ;;  %v4215_v25 = vpop.f32.mrf.mxu0 }
0x1317   :  { %v1334_v28 = vadd.f32 %v1333_v24, %v3932_v44 }
0x1318   :  { %v3347_v23 = vpop.f32.mrf.mxu1  ;;  %v3380_v52 = vpop.f32.mrf.mxu0 }
0x1319   :  { %v1407_v53 = vadd.f32 %v4165_v56, %v1334_v28 }
0x131b   :  { %v3004_v41 = vmul.f32 -1.442695, %v1407_v53 }
0x131d   :  { %3622 = vpow2.f32 %v3004_v41 }
0x132a   :  { %v3623_v46 = vpop.eup %3622 }
0x132b   :  { %v1411_v30 = vadd.f32 1.0, %v3623_v46 }
0x132d   :  { %3624 = vrcp.f32 %v1411_v30 }
0x133a   :  { %v3625_v55 = vpop.eup %3624 }
0x133b   :  { %v1419_v58 = vmul.f32 %v3625_v55, %v1417_v37  ;;  %v1426_v9 = vsub.f32 1.0, %v3625_v55  ;;  %v1432_v56 = vmul.f32 %v3625_v55, %v4139_v54 }
0x133d   :  { %1421 = vrot.lane.b32.xlu0 %v1419_v58, %s3708_s21 }
0x13af   :  { %v1422_v38 = vpop.permute.xlu0 %1421 }
0x13b0   :  { %v1424_v3 = vadd.f32 %v1422_v38, %v1334_v28  ;;  %v4282_v28 = vld [vmem:[%s4651_s6 + $0x18] sm:$0xff] }
0x13b2   :  { %3626 = vtanh.f32 %v1424_v3 }
0x13bf   :  { %v3627_v8 = vpop.eup %3626 }
0x13c0   :  { %1428 = vrot.lane.b32.xlu1 %v3627_v8, %s3709_s25 }
0x1432   :  { %v1429_v13 = vpop.permute.xlu1 %1428 }
0x1433   :  { %v1431_v17 = vmul.f32 %v1429_v13, %v1426_v9 }
0x1435   :  { %v4222_v19 = vadd.f32 %v1432_v56, %v1431_v17 }
0x1437   :  { %1435 = vrot.lane.b32.xlu0 %v4222_v19, %s3709_s25 }
0x14a9   :  { %v1436_v63 = vpop.permute.xlu0 %1435 }
0x14aa   :  { %3368 = vmatmul.mubr.msk.f32.vlgmr.msra.gmra.mxu1 %vm61_vm1, %v1436_v63  ;;  %3401 = vmatmul.mubr.msk.f32.vlgmr.msra.gmra.mxu0 %vm61_vm1, %v1436_v63 }
0x14ab   :  { %3382 = vmatpush3.msra.mxu1 %v3849_v26  ;;  %3415 = vmatpush3.msra.mxu0 %v3778_v1 }
0x14ac   :  { %3383 = vmatprep.subr.mxu1 %v3706_v0  ;;  %3416 = vmatprep.subr.mxu0 %v3706_v0 }
0x14ad   :  { %3384 = vmatpush3.msra.mxu1 %v3854_v27  ;;  %3417 = vmatpush3.msra.mxu0 %v3783_v2 }
0x14ae   :  { %3385 = vmatprep.subr.mxu1 %v3706_v0  ;;  %3418 = vmatprep.subr.mxu0 %v3706_v0 }
0x14af   :  { %3386 = vmatpush3.msra.mxu1 %v3868_v29  ;;  %3419 = vmatpush3.msra.mxu0 %v3796_v4 }
0x14b0   :  { %3387 = vmatprep.subr.mxu1 %v3706_v0  ;;  %3420 = vmatprep.subr.mxu0 %v3706_v0 }
0x14b1   :  { %3388 = vmatpush3.msra.mxu1 %v3884_v31  ;;  %3389 = vmatprep.mubr.msk.f32.mxu1 %vm3707_vm0, %v3706_v0 }
0x14b2   :  { %3421 = vmatpush3.msra.mxu0 %v3806_v5  ;;  %3422 = vmatprep.mubr.msk.f32.mxu0 %vm3707_vm0, %v3706_v0  ;;  %v1607_v5 = vadd.f32 %v4215_v25, %v3815_v6 }
0x14b3   :  { %3403 = vmatprep.subr.mxu1 %v3706_v0  ;;  %3436 = vmatprep.subr.mxu0 %v3706_v0 }
0x156a   :  { %v1505_v1 = vpop.f32.mrf.mxu1  ;;  %v4248_v2 = vpop.f32.mrf.mxu0 }
0x156b   :  { %v1506_v4 = vadd.f32 %v1505_v1, %v3998_v16  ;;  %v1779_v33 = vadd.f32 %v4248_v2, %v3911_v39 }
0x156c   :  { %v3369_v26 = vpop.f32.mrf.mxu1  ;;  %v3402_v27 = vpop.f32.mrf.mxu0 }
0x156d   :  { %3628 = vtanh.f32 %v1506_v4  ;;  %v4348_v4 = vld [vmem:[%s4652_s4 + $0x10] sm:$0xff]  ;;  %v4362_v27 = vld [vmem:[%s4652_s4 + $0x8] sm:$0xff] }
0x156e   :  { %v4354_v26 = vld [vmem:[%s4647_s2 + $0x10] sm:$0xff] }
0x157a   :  { %v4251_v29 = vpop.eup %3628 }
0x157b   :  { %1522 = vperm.xlu0 %3566, %v4251_v29   ;;  %1517 = vperm.xlu1 %3565, %v4251_v29  }
0x157f   :  { %1609 = vrot.lane.b32.xlu1 %v1607_v5, %s3708_s21  ;;  %3567 = vset.pattern.permute.xlu0 %v3711_v15  ;;  %v4368_v5 = vld [vmem:[%s4647_s2 + $0x8] sm:$0xff] }
0x1580   :  { %3568 = vset.pattern.permute.xlu1 %v3710_v14 }
0x15f6   :  { %v1523_v31 = vpop.permute.xlu0 %1522  ;;  %v1518_v54 = vpop.permute.xlu1 %1517 }
0x15f7   :  { %v1525_v20 = vmul.f32 %v3827_v11, %v1523_v31  ;;  %v1520_v21 = vmul.f32 %v1518_v54, %v3822_v10  ;;  %v4376_v31 = vld [vmem:[%s4652_s4] sm:$0xff] }
0x15f8   :  { %v4384_v54 = vld [vmem:[%s4647_s2] sm:$0xff] }
0x15f9   :  { %v1526_v32 = vadd.f32 %v1525_v20, %v1520_v21 }
0x15fa   :  { %v1610_v12 = vpop.permute.xlu1 %1609 }
0x15fb   :  { %v1529_v57 = vadd.f32 %v3006_v22, %v1526_v32 }
0x15fd   :  { %v1600_v34 = vadd.f32 %v4215_v25, %v1529_v57 }
0x15ff   :  { %v3008_v35 = vmul.f32 -1.442695, %v1600_v34 }
0x1601   :  { %3630 = vpow2.f32 %v3008_v35 }
0x160e   :  { %v3631_v18 = vpop.eup %3630 }
0x160f   :  { %v1604_v36 = vadd.f32 1.0, %v3631_v18 }
0x1611   :  { %3632 = vrcp.f32 %v1604_v36  ;;  %v4406_v36 = vld [vmem:[%s4649_s1 + $0x4] sm:$0xf] }
0x161e   :  { %v3633_v40 = vpop.eup %3632 }
0x161f   :  { %v1612_v42 = vmul.f32 %v3633_v40, %v1610_v12  ;;  %v1619_v45 = vsub.f32 1.0, %v3633_v40  ;;  %v1625_v49 = vmul.f32 %v3633_v40, %v4189_v50  ;;  %v4291_v50 = vld [vmem:[%s4651_s6 + $0x10] sm:$0xff]  ;;  %v4412_v12 = vld [vmem:[%s4649_s1] sm:$0xf] }
0x1621   :  { %1614 = vrot.lane.b32.xlu1 %v1612_v42, %s3708_s21 }
0x1693   :  { %v1615_v11 = vpop.permute.xlu1 %1614 }
0x1694   :  { %v1617_v10 = vadd.f32 %v1615_v11, %v1529_v57  ;;  %v3013_v11 = vld [vmem:[%s4650_s0 + $0x14] sm:$0xf] }
0x1696   :  { %3634 = vtanh.f32 %v1617_v10 }
0x16a3   :  { %v3635_v43 = vpop.eup %3634 }
0x16a4   :  { %1621 = vrot.lane.b32.xlu0 %v3635_v43, %s3709_s25 }
0x16a8   :  { %1781 = vrot.lane.b32.xlu0 %v1779_v33, %s3708_s21 }
0x1716   :  { %v1622_v48 = vpop.permute.xlu0 %1621 }
0x1717   :  { %v1624_v51 = vmul.f32 %v1622_v48, %v1619_v45 }
0x1719   :  { %v4272_v24 = vadd.f32 %v1625_v49, %v1624_v51 }
0x171a   :  { %v1782_v58 = vpop.permute.xlu0 %1781 }
0x171b   :  { %1628 = vrot.lane.b32.xlu1 %v4272_v24, %s3709_s25 }
0x178d   :  { %v1629_v25 = vpop.permute.xlu1 %1628 }
0x178e   :  { %3390 = vmatmul.mubr.msk.f32.vlgmr.msra.gmra.mxu1 %vm61_vm1, %v1629_v25  ;;  %3423 = vmatmul.mubr.msk.f32.vlgmr.msra.gmra.mxu0 %vm61_vm1, %v1629_v25 }
0x178f   :  { %3404 = vmatpush3.msra.mxu1 %v3941_v59  ;;  %3437 = vmatpush3.msra.mxu0 %v4282_v28  ;;  %v4300_v59 = vld [vmem:[%s4651_s6 + $0x8] sm:$0xff] }
0x1790   :  { %3405 = vmatprep.subr.mxu1 %v3706_v0  ;;  %3438 = vmatprep.subr.mxu0 %v3706_v0 }
0x1791   :  { %3406 = vmatpush3.msra.mxu1 %v3946_v60  ;;  %3439 = vmatpush3.msra.mxu0 %v4291_v50  ;;  %v4311_v60 = vld [vmem:[%s4651_s6] sm:$0xff] }
0x1792   :  { %3407 = vmatprep.subr.mxu1 %v3706_v0  ;;  %3440 = vmatprep.subr.mxu0 %v3706_v0 }
0x1793   :  { %3408 = vmatpush3.msra.mxu1 %v3953_v61  ;;  %3441 = vmatpush3.msra.mxu0 %v4300_v59 }
0x1794   :  { %3409 = vmatprep.subr.mxu1 %v3706_v0  ;;  %3442 = vmatprep.subr.mxu0 %v3706_v0 }
0x1795   :  { %3410 = vmatpush3.msra.mxu1 %v3960_v62  ;;  %3411 = vmatprep.mubr.msk.f32.mxu1 %vm3707_vm0, %v3706_v0 }
0x1796   :  { %3443 = vmatpush3.msra.mxu0 %v4311_v60  ;;  %3444 = vmatprep.mubr.msk.f32.mxu0 %vm3707_vm0, %v3706_v0 }
0x1797   :  { %3425 = vmatprep.subr.mxu1 %v3706_v0  ;;  %3458 = vmatprep.subr.mxu0 %v3706_v0 }
0x184e   :  { %v1698_v61 = vpop.f32.mrf.mxu1  ;;  %v4318_v23 = vpop.f32.mrf.mxu0 }
0x184f   :  { %v1699_v62 = vadd.f32 %v1698_v61, %v3932_v44  ;;  %v1972_v35 = vadd.f32 %v4318_v23, %v3815_v6 }
0x1850   :  { %v3391_v52 = vpop.f32.mrf.mxu1  ;;  %v3424_v53 = vpop.f32.mrf.mxu0 }
0x1851   :  { %v1772_v41 = vadd.f32 %v4248_v2, %v1699_v62  ;;  %v4334_v2 = vld [vmem:[%s4652_s4 + $0x18] sm:$0xff] }
0x1853   :  { %v3011_v46 = vmul.f32 -1.442695, %v1772_v41 }
0x1855   :  { %3636 = vpow2.f32 %v3011_v46 }
0x1862   :  { %v3637_v30 = vpop.eup %3636 }
0x1863   :  { %v1776_v55 = vadd.f32 1.0, %v3637_v30 }
0x1865   :  { %3638 = vrcp.f32 %v1776_v55 }
0x1872   :  { %v3639_v37 = vpop.eup %3638 }
0x1873   :  { %v1784_v38 = vmul.f32 %v3639_v37, %v1782_v58  ;;  %v1791_v44 = vsub.f32 1.0, %v3639_v37  ;;  %v1797_v56 = vmul.f32 %v3639_v37, %v4222_v19  ;;  %v4340_v19 = vld [vmem:[%s4647_s2 + $0x18] sm:$0xff]  ;;  %s3717_s2 = smov 12  }
0x1875   :  { %1786 = vrot.lane.b32.xlu1 %v1784_v38, %s3708_s21  ;;  %v4434_v38 = vld [vmem:[%s4655_s8 + $0x18] sm:$0xff] }
0x18e7   :  { %v1787_v3 = vpop.permute.xlu1 %1786 }
0x18e8   :  { %v1789_v8 = vadd.f32 %v1787_v3, %v1699_v62  ;;  %v4452_v3 = vld [vmem:[%s4655_s8 + $0x8] sm:$0xff] }
0x18ea   :  { %3640 = vtanh.f32 %v1789_v8  ;;  %v4461_v8 = vld [vmem:[%s4655_s8] sm:$0xff] }
0x18f7   :  { %v3641_v9 = vpop.eup %3640 }
0x18f8   :  { %1793 = vrot.lane.b32.xlu0 %v3641_v9, %s3709_s25 }
0x196a   :  { %v1794_v13 = vpop.permute.xlu0 %1793 }
0x196b   :  { %v1796_v17 = vmul.f32 %v1794_v13, %v1791_v44  ;;  %v4476_v13 = vld [vmem:[%s4654_s5] sm:$0xf] }
0x196d   :  { %v4325_v63 = vadd.f32 %v1797_v56, %v1796_v17 }
0x196f   :  { %1800 = vrot.lane.b32.xlu1 %v4325_v63, %s3709_s25 }
0x19e1   :  { %v1801_v1 = vpop.permute.xlu1 %1800 }
0x19e2   :  { %3412 = vmatmul.mubr.msk.f32.vlgmr.msra.gmra.mxu1 %vm61_vm1, %v1801_v1  ;;  %3445 = vmatmul.mubr.msk.f32.vlgmr.msra.gmra.mxu0 %vm61_vm1, %v1801_v1 }
0x19e3   :  { %3426 = vmatpush3.msra.mxu1 %v4334_v2  ;;  %3459 = vmatpush3.msra.mxu0 %v4340_v19 }
0x19e4   :  { %3427 = vmatprep.subr.mxu1 %v3706_v0  ;;  %3460 = vmatprep.subr.mxu0 %v3706_v0 }
0x19e5   :  { %3428 = vmatpush3.msra.mxu1 %v4348_v4  ;;  %3461 = vmatpush3.msra.mxu0 %v4354_v26 }
0x19e6   :  { %3429 = vmatprep.subr.mxu1 %v3706_v0  ;;  %3462 = vmatprep.subr.mxu0 %v3706_v0 }
0x19e7   :  { %3430 = vmatpush3.msra.mxu1 %v4362_v27  ;;  %3463 = vmatpush3.msra.mxu0 %v4368_v5 }
0x19e8   :  { %3431 = vmatprep.subr.mxu1 %v3706_v0  ;;  %3464 = vmatprep.subr.mxu0 %v3706_v0 }
0x19e9   :  { %3432 = vmatpush3.msra.mxu1 %v4376_v31  ;;  %3433 = vmatprep.mubr.msk.f32.mxu1 %vm3707_vm0, %v3706_v0 }
0x19ea   :  { %3465 = vmatpush3.msra.mxu0 %v4384_v54  ;;  %3466 = vmatprep.mubr.msk.f32.mxu0 %vm3707_vm0, %v3706_v0 }
0x19eb   :  { %3447 = vmatprep.subr.mxu1 %v3706_v0  ;;  %3480 = vmatprep.subr.mxu0 %v3706_v0 }
0x1aa2   :  { %v1870_v20 = vpop.f32.mrf.mxu1  ;;  %v4391_v21 = vpop.f32.mrf.mxu0 }
0x1aa3   :  { %v1871_v22 = vadd.f32 %v1870_v20, %v3998_v16  ;;  %v2144_v41 = vadd.f32 %v4391_v21, %v3911_v39 }
0x1aa4   :  { %v3413_v32 = vpop.f32.mrf.mxu1  ;;  %v3446_v57 = vpop.f32.mrf.mxu0 }
0x1aa5   :  { %3642 = vtanh.f32 %v1871_v22 }
0x1ab2   :  { %v4394_v34 = vpop.eup %3642 }
0x1ab3   :  { %1887 = vperm.xlu1 %3568, %v4394_v34   ;;  %1882 = vperm.xlu0 %3567, %v4394_v34  }
0x1ab7   :  { %1974 = vrot.lane.b32.xlu1 %v1972_v35, %s3708_s21  ;;  %3570 = vset.pattern.permute.xlu0 %v3710_v14 }
0x1ab8   :  { %3569 = vset.pattern.permute.xlu1 %v3711_v15 }
0x1b2e   :  { %v1888_v18 = vpop.permute.xlu1 %1887  ;;  %v1883_v16 = vpop.permute.xlu0 %1882 }
0x1b2f   :  { %v1890_v40 = vmul.f32 %v4406_v36, %v1888_v18  ;;  %v1885_v42 = vmul.f32 %v4412_v12, %v1883_v16 }
0x1b31   :  { %v1891_v10 = vadd.f32 %v1890_v40, %v1885_v42 }
0x1b32   :  { %v1975_v25 = vpop.permute.xlu1 %1974 }
0x1b33   :  { %v1894_v43 = vadd.f32 %v3013_v11, %v1891_v10 }
0x1b35   :  { %v1965_v33 = vadd.f32 %v4318_v23, %v1894_v43 }
0x1b37   :  { %v3015_v45 = vmul.f32 -1.442695, %v1965_v33 }
0x1b39   :  { %3644 = vpow2.f32 %v3015_v45 }
0x1b46   :  { %v3645_v48 = vpop.eup %3644 }
0x1b47   :  { %v1969_v49 = vadd.f32 1.0, %v3645_v48 }
0x1b49   :  { %3646 = vrcp.f32 %v1969_v49 }
0x1b56   :  { %v3647_v51 = vpop.eup %3646 }
0x1b57   :  { %v1977_v61 = vmul.f32 %v3647_v51, %v1975_v25  ;;  %v1984_v23 = vsub.f32 1.0, %v3647_v51  ;;  %v1990_v30 = vmul.f32 %v3647_v51, %v4272_v24  ;;  %v4443_v24 = vld [vmem:[%s4655_s8 + $0x10] sm:$0xff] }
0x1b59   :  { %1979 = vrot.lane.b32.xlu0 %v1977_v61, %s3708_s21 }
0x1bcb   :  { %v1980_v62 = vpop.permute.xlu0 %1979 }
0x1bcc   :  { %v1982_v52 = vadd.f32 %v1980_v62, %v1894_v43 }
0x1bce   :  { %3648 = vtanh.f32 %v1982_v52 }
0x1bdb   :  { %v3649_v53 = vpop.eup %3648 }
0x1bdc   :  { %1986 = vrot.lane.b32.xlu1 %v3649_v53, %s3709_s25 }
0x1be0   :  { %2146 = vrot.lane.b32.xlu1 %v2144_v41, %s3708_s21  ;;  %v3020_v41 = vld [vmem:[%s4650_s0 + $0x18] sm:$0xf] }
0x1c4e   :  { %v1987_v46 = vpop.permute.xlu1 %1986 }
0x1c4f   :  { %v1989_v55 = vmul.f32 %v1987_v46, %v1984_v23 }
0x1c51   :  { %v4425_v37 = vadd.f32 %v1990_v30, %v1989_v55 }
0x1c52   :  { %v2147_v18 = vpop.permute.xlu1 %2146 }
0x1c53   :  { %1993 = vrot.lane.b32.xlu0 %v4425_v37, %s3709_s25 }
0x1cc5   :  { %v1994_v58 = vpop.permute.xlu0 %1993 }
0x1cc6   :  { %3434 = vmatmul.mubr.msk.f32.vlgmr.msra.gmra.mxu1 %vm61_vm1, %v1994_v58  ;;  %3467 = vmatmul.mubr.msk.f32.vlgmr.msra.gmra.mxu0 %vm61_vm1, %v1994_v58 }
0x1cc7   :  { %3448 = vmatpush3.msra.mxu1 %v4434_v38  ;;  %3481 = vmatpush3.msra.mxu0 %v4282_v28 }
0x1cc8   :  { %3449 = vmatprep.subr.mxu1 %v3706_v0  ;;  %3482 = vmatprep.subr.mxu0 %v3706_v0 }
0x1cc9   :  { %3450 = vmatpush3.msra.mxu1 %v4443_v24  ;;  %3483 = vmatpush3.msra.mxu0 %v4291_v50 }
0x1cca   :  { %3451 = vmatprep.subr.mxu1 %v3706_v0  ;;  %3484 = vmatprep.subr.mxu0 %v3706_v0 }
0x1ccb   :  { %3452 = vmatpush3.msra.mxu1 %v4452_v3  ;;  %3485 = vmatpush3.msra.mxu0 %v4300_v59 }
0x1ccc   :  { %3453 = vmatprep.subr.mxu1 %v3706_v0  ;;  %3486 = vmatprep.subr.mxu0 %v3706_v0 }
0x1ccd   :  { %3454 = vmatpush3.msra.mxu1 %v4461_v8  ;;  %3455 = vmatprep.mubr.msk.f32.mxu1 %vm3707_vm0, %v3706_v0 }
0x1cce   :  { %3487 = vmatpush3.msra.mxu0 %v4311_v60  ;;  %3488 = vmatprep.mubr.msk.f32.mxu0 %vm3707_vm0, %v3706_v0 }
0x1ccf   :  { %3469 = vmatprep.subr.mxu1 %v3706_v0  ;;  %3502 = vmatprep.subr.mxu0 %v3706_v0 }
0x1d86   :  { %v2063_v9 = vpop.f32.mrf.mxu1  ;;  %v4471_v44 = vpop.f32.mrf.mxu0 }
0x1d87   :  { %v2064_v56 = vadd.f32 %v4476_v13, %v2063_v9  ;;  %v2337_v25 = vadd.f32 %v4471_v44, %v3815_v6 }
0x1d88   :  { %v3435_v17 = vpop.f32.mrf.mxu1  ;;  %v3468_v1 = vpop.f32.mrf.mxu0 }
0x1d89   :  { %v2137_v20 = vadd.f32 %v4391_v21, %v2064_v56 }
0x1d8b   :  { %v3018_v22 = vmul.f32 -1.442695, %v2137_v20 }
0x1d8d   :  { %3650 = vpow2.f32 %v3018_v22 }
0x1d9a   :  { %v3651_v32 = vpop.eup %3650 }
0x1d9b   :  { %v2141_v57 = vadd.f32 1.0, %v3651_v32 }
0x1d9d   :  { %3652 = vrcp.f32 %v2141_v57 }
0x1daa   :  { %v3653_v35 = vpop.eup %3652 }
0x1dab   :  { %v2149_v16 = vmul.f32 %v3653_v35, %v2147_v18  ;;  %v2156_v10 = vsub.f32 1.0, %v3653_v35  ;;  %v2162_v21 = vmul.f32 %v3653_v35, %v4325_v63 }
0x1dad   :  { %2151 = vrot.lane.b32.xlu0 %v2149_v16, %s3708_s21 }
0x1e1f   :  { %v2152_v40 = vpop.permute.xlu0 %2151 }
0x1e20   :  { %v2154_v42 = vadd.f32 %v2152_v40, %v2064_v56 }
0x1e22   :  { %3654 = vtanh.f32 %v2154_v42 }
0x1e2f   :  { %v3655_v11 = vpop.eup %3654 }
0x1e30   :  { %2158 = vrot.lane.b32.xlu1 %v3655_v11, %s3709_s25 }
0x1ea2   :  { %v2159_v43 = vpop.permute.xlu1 %2158 }
0x1ea3   :  { %v2161_v33 = vmul.f32 %v2159_v43, %v2156_v10 }
0x1ea5   :  { %v4483_v45 = vadd.f32 %v2162_v21, %v2161_v33 }
0x1ea7   :  { %2165 = vrot.lane.b32.xlu0 %v4483_v45, %s3709_s25 }
0x1f19   :  { %v2166_v48 = vpop.permute.xlu0 %2165 }
0x1f1a   :  { %3456 = vmatmul.mubr.msk.f32.vlgmr.msra.gmra.mxu1 %vm61_vm1, %v2166_v48  ;;  %3489 = vmatmul.mubr.msk.f32.vlgmr.msra.gmra.mxu0 %vm61_vm1, %v2166_v48 }
0x1f1b   :  { %3470 = vmatpush3.msra.mxu1 %v4334_v2  ;;  %3503 = vmatpush3.msra.mxu0 %v4340_v19 }
0x1f1c   :  { %3471 = vmatprep.subr.mxu1 %v3706_v0  ;;  %3504 = vmatprep.subr.mxu0 %v3706_v0 }
0x1f1d   :  { %3472 = vmatpush3.msra.mxu1 %v4348_v4  ;;  %3505 = vmatpush3.msra.mxu0 %v4354_v26  ;;  %v4514_v26 = vld [vmem:[%s4656_s9] sm:$0xf] }
0x1f1e   :  { %3473 = vmatprep.subr.mxu1 %v3706_v0  ;;  %3506 = vmatprep.subr.mxu0 %v3706_v0 }
0x1f1f   :  { %3474 = vmatpush3.msra.mxu1 %v4362_v27  ;;  %3507 = vmatpush3.msra.mxu0 %v4368_v5 }
0x1f20   :  { %3475 = vmatprep.subr.mxu1 %v3706_v0  ;;  %3508 = vmatprep.subr.mxu0 %v3706_v0 }
0x1f21   :  { %3476 = vmatpush3.msra.mxu1 %v4376_v31  ;;  %3477 = vmatprep.mubr.msk.f32.mxu1 %vm3707_vm0, %v3706_v0 }
0x1f22   :  { %3509 = vmatpush3.msra.mxu0 %v4384_v54  ;;  %3510 = vmatprep.mubr.msk.f32.mxu0 %vm3707_vm0, %v3706_v0 }
0x1f23   :  { %3491 = vmatprep.subr.mxu1 %v3706_v0  ;;  %3524 = vmatprep.subr.mxu0 %v3706_v0 }
0x1fda   :  { %v2235_v63 = vpop.f32.mrf.mxu1  ;;  %v4509_v19 = vpop.f32.mrf.mxu0 }
0x1fdb   :  { %v2236_v5 = vadd.f32 %v4514_v26, %v2235_v63  ;;  %v2509_v32 = vadd.f32 %v4509_v19, %v3911_v39 }
0x1fdc   :  { %v3457_v49 = vpop.f32.mrf.mxu1  ;;  %v3490_v51 = vpop.f32.mrf.mxu0 }
0x1fdd   :  { %3656 = vtanh.f32 %v2236_v5 }
0x1fea   :  { %v4517_v54 = vpop.eup %3656 }
0x1feb   :  { %2252 = vperm.xlu0 %3570, %v4517_v54   ;;  %2247 = vperm.xlu1 %3569, %v4517_v54  }
0x1fef   :  { %2339 = vrot.lane.b32.xlu1 %v2337_v25, %s3708_s21  ;;  %3571 = vset.pattern.permute.xlu0 %v3711_v15 }
0x1ff0   :  { %3572 = vset.pattern.permute.xlu1 %v3710_v14 }
0x2066   :  { %v2253_v61 = vpop.permute.xlu0 %2252  ;;  %v2248_v62 = vpop.permute.xlu1 %2247 }
0x2067   :  { %v2255_v52 = vmul.f32 %v4406_v36, %v2253_v61  ;;  %v2250_v53 = vmul.f32 %v4412_v12, %v2248_v62 }
0x2069   :  { %v2256_v23 = vadd.f32 %v2255_v52, %v2250_v53 }
0x206a   :  { %v2340_v56 = vpop.permute.xlu1 %2339 }
0x206b   :  { %v2259_v46 = vadd.f32 %v3020_v41, %v2256_v23 }
0x206d   :  { %v2330_v30 = vadd.f32 %v4471_v44, %v2259_v46 }
0x206f   :  { %v3022_v55 = vmul.f32 -1.442695, %v2330_v30 }
0x2071   :  { %3658 = vpow2.f32 %v3022_v55 }
0x207e   :  { %v3659_v58 = vpop.eup %3658 }
0x207f   :  { %v2334_v15 = vadd.f32 1.0, %v3659_v58  ;;  %v3027_v58 = vld [vmem:[%s4650_s0 + $0x1c] sm:$0xf]  ;;  %s3712_s0 = smov 2  }
0x2081   :  { %3660 = vrcp.f32 %v2334_v15 }
0x208e   :  { %v3661_v9 = vpop.eup %3660 }
0x208f   :  { %v2342_v17 = vmul.f32 %v3661_v9, %v2340_v56  ;;  %v2349_v44 = vsub.f32 1.0, %v3661_v9  ;;  %v2355_v35 = vmul.f32 %v3661_v9, %v4425_v37 }
0x2091   :  { %2344 = vrot.lane.b32.xlu1 %v2342_v17, %s3708_s21 }
0x2103   :  { %v2345_v1 = vpop.permute.xlu1 %2344 }
0x2104   :  { %v2347_v20 = vadd.f32 %v2345_v1, %v2259_v46 }
0x2106   :  { %3662 = vtanh.f32 %v2347_v20 }
0x2113   :  { %v3663_v22 = vpop.eup %3662 }
0x2114   :  { %2351 = vrot.lane.b32.xlu0 %v3663_v22, %s3709_s25 }
0x2118   :  { %2511 = vrot.lane.b32.xlu0 %v2509_v32, %s3708_s21 }
0x2186   :  { %v2352_v57 = vpop.permute.xlu0 %2351 }
0x2187   :  { %v2354_v18 = vmul.f32 %v2352_v57, %v2349_v44 }
0x2189   :  { %v4538_v16 = vadd.f32 %v2355_v35, %v2354_v18 }
0x218b   :  { %2358 = vrot.lane.b32.xlu1 %v4538_v16, %s3709_s25 }
0x21fd   :  { %v2359_v40 = vpop.permute.xlu1 %2358 }
0x21fe   :  { %3478 = vmatmul.mubr.msk.f32.vlgmr.msra.gmra.mxu1 %vm61_vm1, %v2359_v40  ;;  %3511 = vmatmul.mubr.msk.f32.vlgmr.msra.gmra.mxu0 %vm61_vm1, %v2359_v40 }
0x21ff   :  { %3492 = vmatpush3.msra.mxu1 %v4434_v38  ;;  %3525 = vmatpush3.msra.mxu0 %v4282_v28 }
0x2200   :  { %3493 = vmatprep.subr.mxu1 %v3706_v0  ;;  %3526 = vmatprep.subr.mxu0 %v3706_v0 }
0x2201   :  { %3494 = vmatpush3.msra.mxu1 %v4443_v24  ;;  %3527 = vmatpush3.msra.mxu0 %v4291_v50 }
0x2202   :  { %3495 = vmatprep.subr.mxu1 %v3706_v0  ;;  %3528 = vmatprep.subr.mxu0 %v3706_v0 }
0x2203   :  { %3496 = vmatpush3.msra.mxu1 %v4452_v3  ;;  %3529 = vmatpush3.msra.mxu0 %v4300_v59 }
0x2204   :  { %3497 = vmatprep.subr.mxu1 %v3706_v0  ;;  %3530 = vmatprep.subr.mxu0 %v3706_v0 }
0x2205   :  { %3498 = vmatpush3.msra.mxu1 %v4461_v8  ;;  %3499 = vmatprep.mubr.msk.f32.mxu1 %vm3707_vm0, %v3706_v0 }
0x2206   :  { %3531 = vmatpush3.msra.mxu0 %v4311_v60  ;;  %3532 = vmatprep.mubr.msk.f32.mxu0 %vm3707_vm0, %v3706_v0  ;;  %v2512_v60 = vpop.permute.xlu0 %2511 }
0x2207   :  { %3513 = vmatprep.subr.mxu1 %v3706_v0 }
0x22be   :  { %v2428_v28 = vpop.f32.mrf.mxu1  ;;  %v2691_v50 = vpop.f32.mrf.mxu0 }
0x22bf   :  { %v2429_v59 = vadd.f32 %v4476_v13, %v2428_v28 }
0x22c0   :  { %v3479_v37 = vpop.f32.mrf.mxu1  ;;  %v3512_v42 = vpop.f32.mrf.mxu0 }
0x22c1   :  { %v2502_v11 = vadd.f32 %v4509_v19, %v2429_v59 }
0x22c3   :  { %v3025_v10 = vmul.f32 -1.442695, %v2502_v11 }
0x22c5   :  { %3664 = vpow2.f32 %v3025_v10 }
0x22d2   :  { %v3665_v43 = vpop.eup %3664 }
0x22d3   :  { %v2506_v21 = vadd.f32 1.0, %v3665_v43 }
0x22d5   :  { %3666 = vrcp.f32 %v2506_v21 }
0x22e2   :  { %v3667_v33 = vpop.eup %3666 }
0x22e3   :  { %v2514_v48 = vmul.f32 %v3667_v33, %v2512_v60  ;;  %v2521_v51 = vsub.f32 1.0, %v3667_v33  ;;  %v2527_v19 = vmul.f32 %v3667_v33, %v4483_v45 }
0x22e5   :  { %2516 = vrot.lane.b32.xlu1 %v2514_v48, %s3708_s21 }
0x2357   :  { %v2517_v63 = vpop.permute.xlu1 %2516 }
0x2358   :  { %v2519_v5 = vadd.f32 %v2517_v63, %v2429_v59 }
0x235a   :  { %3668 = vtanh.f32 %v2519_v5 }
0x2367   :  { %v3669_v49 = vpop.eup %3668 }
0x2368   :  { %2523 = vrot.lane.b32.xlu0 %v3669_v49, %s3709_s25 }
0x23da   :  { %v2524_v25 = vpop.permute.xlu0 %2523 }
0x23db   :  { %v2526_v61 = vmul.f32 %v2524_v25, %v2521_v51 }
0x23dd   :  { %v4568_v62 = vadd.f32 %v2527_v19, %v2526_v61 }
0x23df   :  { %2530 = vrot.lane.b32.xlu1 %v4568_v62, %s3709_s25 }
0x2451   :  { %v2531_v52 = vpop.permute.xlu1 %2530 }
0x2452   :  { %3500 = vmatmul.mubr.msk.f32.vlgmr.msra.gmra.mxu1 %vm61_vm1, %v2531_v52  ;;  %3533 = vmatmul.mubr.msk.f32.vlgmr.msra.gmra.mxu0 %vm61_vm1, %v2531_v52 }
0x2453   :  { %3514 = vmatpush3.msra.mxu1 %v4334_v2  ;;  %3521 = vmatprep.mubr.msk.f32.mxu1 %vm3707_vm0, %v3706_v0 }
0x2454   :  { %3515 = vmatprep.subr.mxu1 %v3706_v0 }
0x2455   :  { %3516 = vmatpush3.msra.mxu1 %v4348_v4  ;;  %v2702_v4 = vadd.f32 %v2691_v50, %v3815_v6 }
0x2456   :  { %3517 = vmatprep.subr.mxu1 %v3706_v0 }
0x2457   :  { %3518 = vmatpush3.msra.mxu1 %v4362_v27 }
0x2458   :  { %3519 = vmatprep.subr.mxu1 %v3706_v0 }
0x2459   :  { %3520 = vmatpush3.msra.mxu1 %v4376_v31 }
0x245a   :  { %3535 = vmatprep.subr.mxu1 %v3706_v0 }
0x2512   :  { %v2600_v45 = vpop.f32.mrf.mxu1  ;;  %v2863_v53 = vpop.f32.mrf.mxu0 }
0x2513   :  { %v2601_v2 = vadd.f32 %v4514_v26, %v2600_v45  ;;  %v2874_v44 = vadd.f32 %v2863_v53, %v3911_v39 }
0x2514   :  { %v3501_v41 = vpop.f32.mrf.mxu1  ;;  %v3534_v23 = vpop.f32.mrf.mxu0 }
0x2515   :  { %3670 = vtanh.f32 %v2601_v2 }
0x2522   :  { %v4585_v46 = vpop.eup %3670 }
0x2523   :  { %2617 = vperm.xlu1 %3572, %v4585_v46   ;;  %2612 = vperm.xlu0 %3571, %v4585_v46  }
0x2527   :  { %2704 = vrot.lane.b32.xlu1 %v2702_v4, %s3708_s21  ;;  %3573 = vset.pattern.permute.xlu0 %v3710_v14 }
0x259e   :  { %v2618_v27 = vpop.permute.xlu1 %2617  ;;  %v2613_v31 = vpop.permute.xlu0 %2612 }
0x259f   :  { %v2620_v30 = vmul.f32 %v4406_v36, %v2618_v27  ;;  %v2615_v55 = vmul.f32 %v4412_v12, %v2613_v31 }
0x25a1   :  { %v2621_v15 = vadd.f32 %v2620_v30, %v2615_v55 }
0x25a2   :  { %v2705_v14 = vpop.permute.xlu1 %2704 }
0x25a3   :  { %v2624_v9 = vadd.f32 %v3027_v58, %v2621_v15 }
0x25a5   :  { %v2695_v56 = vadd.f32 %v2691_v50, %v2624_v9 }
0x25a7   :  { %v3029_v17 = vmul.f32 -1.442695, %v2695_v56 }
0x25a9   :  { %3672 = vpow2.f32 %v3029_v17 }
0x25b6   :  { %v3673_v6 = vpop.eup %3672 }
0x25b7   :  { %v2699_v1 = vadd.f32 1.0, %v3673_v6 }
0x25b9   :  { %3674 = vrcp.f32 %v2699_v1 }
0x25c6   :  { %v3675_v20 = vpop.eup %3674 }
0x25c7   :  { %v2707_v22 = vmul.f32 %v3675_v20, %v2705_v14  ;;  %v2714_v57 = vsub.f32 1.0, %v3675_v20  ;;  %v2720_v18 = vmul.f32 %v3675_v20, %v4538_v16 }
0x25c9   :  { %2709 = vrot.lane.b32.xlu0 %v2707_v22, %s3708_s21 }
0x263b   :  { %v2710_v36 = vpop.permute.xlu0 %2709 }
0x263c   :  { %v2712_v32 = vadd.f32 %v2710_v36, %v2624_v9 }
0x263e   :  { %3676 = vtanh.f32 %v2712_v32 }
0x264b   :  { %v3677_v12 = vpop.eup %3676 }
0x264c   :  { %2716 = vrot.lane.b32.xlu1 %v3677_v12, %s3709_s25 }
0x2650   :  { %2876 = vrot.lane.b32.xlu1 %v2874_v44, %s3708_s21 }
0x26be   :  { %v2717_v35 = vpop.permute.xlu1 %2716 }
0x26bf   :  { %v2719_v40 = vmul.f32 %v2717_v35, %v2714_v57 }
0x26c1   :  { %v2721_v28 = vadd.f32 %v2720_v18, %v2719_v40 }
0x26c3   :  { %2723 = vrot.lane.b32.xlu0 %v2721_v28, %s3709_s25 }
0x2735   :  { %v2724_v50 = vpop.permute.xlu0 %2723 }
0x2736   :  { %3522 = vmatmul.mubr.msk.f32.vlgmr.msra.gmra.mxu1 %vm61_vm1, %v2724_v50 }
0x2737   :  { %3536 = vmatpush3.msra.mxu1 %v4434_v38  ;;  %3543 = vmatprep.mubr.msk.f32.mxu1 %vm3707_vm0, %v3706_v0 }
0x2738   :  { %3537 = vmatprep.subr.mxu1 %v3706_v0 }
0x2739   :  { %3538 = vmatpush3.msra.mxu1 %v4443_v24  ;;  %v2877_v24 = vpop.permute.xlu1 %2876 }
0x273a   :  { %3539 = vmatprep.subr.mxu1 %v3706_v0 }
0x273b   :  { %3540 = vmatpush3.msra.mxu1 %v4452_v3 }
0x273c   :  { %3541 = vmatprep.subr.mxu1 %v3706_v0 }
0x273d   :  { %3542 = vmatpush3.msra.mxu1 %v4461_v8 }
0x27f6   :  { %v2793_v39 = vpop.f32.mrf.mxu1 }
0x27f7   :  { %v2794_v16 = vadd.f32 %v4476_v13, %v2793_v39 }
0x27f8   :  { %v3523_v59 = vpop.f32.mrf.mxu1 }
0x27f9   :  { %v2867_v38 = vadd.f32 %v2863_v53, %v2794_v16 }
0x27fb   :  { %v3032_v37 = vmul.f32 -1.442695, %v2867_v38 }
0x27fd   :  { %3678 = vpow2.f32 %v3032_v37 }
0x280a   :  { %v3679_v42 = vpop.eup %3678 }
0x280b   :  { %v2871_v11 = vadd.f32 1.0, %v3679_v42 }
0x280d   :  { %3680 = vrcp.f32 %v2871_v11 }
0x281a   :  { %v3681_v10 = vpop.eup %3680 }
0x281b   :  { %v2879_v43 = vmul.f32 %v3681_v10, %v2877_v24  ;;  %v2886_v8 = vsub.f32 1.0, %v3681_v10  ;;  %v2892_v33 = vmul.f32 %v3681_v10, %v4568_v62 }
0x281d   :  { %2881 = vrot.lane.b32.xlu0 %v2879_v43, %s3708_s21 }
0x288f   :  { %v2882_v3 = vpop.permute.xlu0 %2881 }
0x2890   :  { %v2884_v21 = vadd.f32 %v2882_v3, %v2794_v16 }
0x2892   :  { %3682 = vtanh.f32 %v2884_v21 }
0x289f   :  { %v3683_v0 = vpop.eup %3682 }
0x28a0   :  { %2888 = vrot.lane.b32.xlu1 %v3683_v0, %s3709_s25 }
0x28a4   :  { %781 = vrot.lane.b32.xlu1 %v4085_v47, %s3712_s0 }
0x28a8   :  { %1511 = vrot.lane.b32.xlu1 %v4251_v29, %s3713_s7 }
0x28ac   :  { %2241 = vrot.lane.b32.xlu1 %v4517_v54, %s3714_s28 }
0x2912   :  { %v2889_v13 = vpop.permute.xlu1 %2888 }
0x2913   :  { %v2891_v60 = vmul.f32 %v2889_v13, %v2886_v8 }
0x2915   :  { %v2893_v48 = vadd.f32 %v2892_v33, %v2891_v60 }
0x2916   :  { %v782_v63 = vpop.permute.xlu1 %781 }
0x2917   :  { %785 = vst.msk [vmem:[%s4657_s10] sm:$0xf] %vm784_vm3, %v782_v63  ;;  %2895 = vrot.lane.b32.xlu0 %v2893_v48, %s3709_s25 }
0x291a   :  { %v1512_v29 = vpop.permute.xlu1 %1511 }
0x291b   :  { %1146 = vrot.lane.b32.xlu0 %v4168_v7, %s3715_s30 }
0x291f   :  { %1876 = vrot.lane.b32.xlu0 %v4394_v34, %s3716_s11  ;;  %v2242_v34 = vpop.permute.xlu1 %2241 }
0x2923   :  { %2606 = vrot.lane.b32.xlu0 %v4585_v46, %s3717_s2 }
0x2989   :  { %v2896_v47 = vpop.permute.xlu0 %2895 }
0x298a   :  { %3544 = vmatmul.mubr.msk.f32.vlgmr.msra.gmra.mxu1 %vm61_vm1, %v2896_v47 }
0x298d   :  { %v1147_v54 = vpop.permute.xlu0 %1146 }
0x298e   :  { %1150 = vst.msk [vmem:[%s4657_s10] sm:$0xf] %vm1149_vm4, %v1147_v54 }
0x298f   :  { %1515 = vst.msk [vmem:[%s4657_s10] sm:$0xf] %vm1514_vm5, %v1512_v29 }
0x2991   :  { %v1877_v7 = vpop.permute.xlu0 %1876 }
0x2992   :  { %1880 = vst.msk [vmem:[%s4657_s10] sm:$0xf] %vm1879_vm6, %v1877_v7 }
0x2993   :  { %2245 = vst.msk [vmem:[%s4657_s10] sm:$0xf] %vm2244_vm7, %v2242_v34 }
0x2995   :  { %v2607_v5 = vpop.permute.xlu0 %2606 }
0x2996   :  { %2610 = vst.msk [vmem:[%s4657_s10] sm:$0xf] %vm2609_vm8, %v2607_v5 }
0x2a4a   :  { %v2965_v49 = vpop.f32.mrf.mxu1 }
0x2a4b   :  { %v2966_v51 = vadd.f32 %v4514_v26, %v2965_v49 }
0x2a4c   :  { %v3545_v25 = vpop.f32.mrf.mxu1 }
0x2a4d   :  { %3684 = vtanh.f32 %v2966_v51 }
0x2a5a   :  { %v3685_v19 = vpop.eup %3684 }
0x2a5b   :  { %2971 = vrot.lane.b32.xlu1 %v3685_v19, %s3718_s18 }
0x2acd   :  { %v2972_v61 = vpop.permute.xlu1 %2971 }
0x2ace   :  { %2975 = vst.msk [vmem:[%s4657_s10] sm:$0xf] %vm2974_vm9, %v2972_v61 }

</bundles_post_ra>
